<compile_context>
chip_gen: v7x
topology: tpu7x:2x2x1
jax: 0.10.0
libtpu: 0.0.40
codegen_flags: <defaults>
</compile_context>

<pallas_src>
import jax
import jax.numpy as jnp
from jax.experimental import pallas as pl
from jax.experimental.pallas import tpu as pltpu

# Problem sizes (small, consistent with the module).
B = 2          # batch
T = 8          # sequence length (attention axis)
D = 32         # d_model
NHEAD = 4
HDIM = D // NHEAD
EPS = 1e-5
PREC = jax.lax.Precision.HIGHEST

# NHEAD divides D, so the uniform head split equals the module's split
# (the module's "last head takes the remainder" only differs otherwise).
assert NHEAD * HDIM == D


def _layernorm(x, gamma, beta):
    mu = jnp.mean(x, axis=-1, keepdims=True)
    var = jnp.mean((x - mu) ** 2, axis=-1, keepdims=True)
    return (x - mu) * jax.lax.rsqrt(var + EPS) * gamma + beta


def tattention_kernel(x_ref, wqkv_ref, w1_ref, w2_ref, p_ref, o_ref):
    # Whole problem resident in VMEM for the single grid step.
    x = x_ref[...]                                     # (B*T, D) float32

    # Packed small params: rows = [g1, b1, g2, b2, bf1, bf2].
    g1 = p_ref[0:1, :]
    b1 = p_ref[1:2, :]
    g2 = p_ref[2:3, :]
    b2 = p_ref[3:4, :]
    bf1 = p_ref[4:5, :]
    bf2 = p_ref[5:6, :]

    # norm1
    xn = _layernorm(x, g1, b1)                          # (B*T, D)

    # Fused Q/K/V projection: one (B*T, D) @ (D, 3D) MXU matmul.
    qkv = jnp.dot(xn, wqkv_ref[...],
                  preferred_element_type=jnp.float32, precision=PREC)

    def to_heads(t2d):
        # (B*T, D) -> (B*NHEAD, T, HDIM); head axis becomes the batch axis.
        t = t2d.reshape(B, T, NHEAD, HDIM)
        t = jnp.transpose(t, (0, 2, 1, 3))              # (B, NHEAD, T, HDIM)
        return t.reshape(B * NHEAD, T, HDIM)

    q = to_heads(qkv[:, 0 * D:1 * D])
    k = to_heads(qkv[:, 1 * D:2 * D])
    v = to_heads(qkv[:, 2 * D:3 * D])

    # All heads in one einsum pair (no per-head loop, no concat).
    # NOTE: no 1/sqrt(d) scaling, exactly as in the reference module.
    s = jnp.einsum('ntd,nsd->nts', q, k,
                   preferred_element_type=jnp.float32, precision=PREC)
    s = s - jnp.max(s, axis=-1, keepdims=True)
    p = jnp.exp(s)
    p = p / jnp.sum(p, axis=-1, keepdims=True)          # exact softmax
    att = jnp.einsum('nts,nsd->ntd', p, v,
                     preferred_element_type=jnp.float32, precision=PREC)

    # Merge heads back to (B*T, D) feature layout (== concat over heads).
    att = jnp.transpose(att.reshape(B, NHEAD, T, HDIM), (0, 2, 1, 3))
    att = att.reshape(B * T, D)

    # residual (with the normalized x, as in the module) + norm2
    xt = _layernorm(xn + att, g2, b2)

    # ffn: Linear -> ReLU -> Linear, then residual (dropout == identity)
    h = jnp.dot(xt, w1_ref[...],
                preferred_element_type=jnp.float32, precision=PREC) + bf1
    h = jnp.maximum(h, 0.0)
    ffn = jnp.dot(h, w2_ref[...],
                  preferred_element_type=jnp.float32, precision=PREC) + bf2

    o_ref[...] = (xt + ffn).astype(o_ref.dtype)


@jax.jit
def tattention_pallas(x, wq_t, wk_t, wv_t, g1, b1, g2, b2, w1_t, bf1, w2_t, bf2):
    # Wrapper-side layout plumbing (fused under jit; free in HBM metadata):
    #   * fuse the three projections into one (D, 3D) weight,
    #   * pack the six small (1, D) params into one (6, D) slab,
    #   * collapse x to a lane-dense 2-D (B*T, D) slab.
    wqkv = jnp.concatenate([wq_t, wk_t, wv_t], axis=1)            # (D, 3D)
    params = jnp.concatenate([g1, b1, g2, b2, bf1, bf2], axis=0)  # (6, D)
    x2 = x.reshape(B * T, D)

    flops = (2 * (B * T) * D * (3 * D)              # fused qkv projection
             + 2 * 2 * (B * NHEAD) * T * T * HDIM   # qk^T and pv (all heads)
             + 2 * 2 * (B * T) * D * D)             # two ffn matmuls
    transcendentals = B * NHEAD * T * T             # exp in softmax
    bytes_accessed = 4 * (2 * B * T * D + D * 3 * D + 2 * D * D + 6 * D)

    out2 = pl.pallas_call(
        tattention_kernel,
        out_shape=jax.ShapeDtypeStruct((B * T, D), x.dtype),
        grid_spec=pltpu.PrefetchScalarGridSpec(
            num_scalar_prefetch=0,
            grid=(1,),                                       # single step
            in_specs=[
                pl.BlockSpec((B * T, D), lambda i: (0, 0)),  # x (2-D slab)
                pl.BlockSpec((D, 3 * D), lambda i: (0, 0)),  # [Wq|Wk|Wv]^T
                pl.BlockSpec((D, D), lambda i: (0, 0)),      # ffn W1^T
                pl.BlockSpec((D, D), lambda i: (0, 0)),      # ffn W2^T
                pl.BlockSpec((6, D), lambda i: (0, 0)),      # packed params
            ],
            out_specs=pl.BlockSpec((B * T, D), lambda i: (0, 0)),
        ),
        compiler_params=pltpu.CompilerParams(
            dimension_semantics=("arbitrary",)),
        cost_estimate=pl.CostEstimate(
            flops=flops,
            transcendentals=transcendentals,
            bytes_accessed=bytes_accessed),
    )(x2, wqkv, w1_t, w2_t, params)

    return out2.reshape(B, T, D)


def tattention_ref(x, wq_t, wk_t, wv_t, g1, b1, g2, b2, w1_t, bf1, w2_t, bf2):
    # Pure-JAX reference mirroring the PyTorch forward (dropout inactive).
    # HIGHEST matmul precision so the f32 reference is comparable to the kernel.
    def ln(z, g, bb):
        mu = jnp.mean(z, axis=-1, keepdims=True)
        var = jnp.mean((z - mu) ** 2, axis=-1, keepdims=True)
        return (z - mu) * jax.lax.rsqrt(var + EPS) * g + bb

    xn = ln(x, g1, b1)
    q = jnp.matmul(xn, wq_t, precision=PREC)
    k = jnp.matmul(xn, wk_t, precision=PREC)
    v = jnp.matmul(xn, wv_t, precision=PREC)
    outs = []
    for i in range(NHEAD):
        lo = i * HDIM
        hi = D if i == NHEAD - 1 else (i + 1) * HDIM
        qh, kh, vh = q[..., lo:hi], k[..., lo:hi], v[..., lo:hi]
        s = jnp.einsum('btd,bsd->bts', qh, kh, precision=PREC)
        p = jax.nn.softmax(s, axis=-1)
        outs.append(jnp.einsum('bts,bsd->btd', p, vh, precision=PREC))
    att = jnp.concatenate(outs, axis=-1)
    xt = ln(xn + att, g2, b2)
    h = jnp.maximum(jnp.matmul(xt, w1_t, precision=PREC) + bf1, 0.0)
    ffn = jnp.matmul(h, w2_t, precision=PREC) + bf2
    return xt + ffn


if __name__ == "__main__":
    key = jax.random.PRNGKey(0)
    keys = jax.random.split(key, 8)

    x = jax.random.normal(keys[0], (B, T, D), dtype=jnp.float32)

    # Deterministic parameter init (weights stored transposed: (in, out)).
    sc = 1.0 / jnp.sqrt(jnp.float32(D))
    wq_t = jax.random.normal(keys[1], (D, D), jnp.float32) * sc
    wk_t = jax.random.normal(keys[2], (D, D), jnp.float32) * sc
    wv_t = jax.random.normal(keys[3], (D, D), jnp.float32) * sc
    w1_t = jax.random.normal(keys[4], (D, D), jnp.float32) * sc
    w2_t = jax.random.normal(keys[5], (D, D), jnp.float32) * sc
    bf1 = jax.random.normal(keys[6], (1, D), jnp.float32) * 0.1
    bf2 = jax.random.normal(keys[7], (1, D), jnp.float32) * 0.1
    g1 = jnp.ones((1, D), jnp.float32)
    b1 = jnp.zeros((1, D), jnp.float32)
    g2 = jnp.ones((1, D), jnp.float32)
    b2 = jnp.zeros((1, D), jnp.float32)

    out = tattention_pallas(x, wq_t, wk_t, wv_t, g1, b1, g2, b2,
                            w1_t, bf1, w2_t, bf2)
    out = jax.block_until_ready(out)

    ref = tattention_ref(x, wq_t, wk_t, wv_t, g1, b1, g2, b2,
                         w1_t, bf1, w2_t, bf2)
    assert out.shape == (B, T, D)
    assert jnp.allclose(out, ref, atol=2e-3, rtol=2e-3), "mismatch vs reference"

    print("KERNEL_OK")
</pallas_src>

<mosaic_0001>
module attributes {stable_mosaic.version = 11 : i64} {
  func.func @tattention_kernel(%arg0: i32, %arg1: memref<16x32xf32, #tpu.memory_space<vmem>>, %arg2: memref<32x96xf32, #tpu.memory_space<vmem>>, %arg3: memref<32x32xf32, #tpu.memory_space<vmem>>, %arg4: memref<32x32xf32, #tpu.memory_space<vmem>>, %arg5: memref<6x32xf32, #tpu.memory_space<vmem>>, %arg6: memref<16x32xf32, #tpu.memory_space<vmem>>) attributes {dimension_semantics = [#tpu.dimension_semantics<arbitrary>], iteration_bounds = array<i64: 1>, scalar_prefetch = 0 : i64, scratch_operands = 0 : i64, tpu.core_type = #tpu.core_type<tc>, window_params = [{pipeline_mode = #tpu.pipeline_mode<synchronous>, transform_indices = @transform_0, window_bounds = array<i64: 16, 32>}, {pipeline_mode = #tpu.pipeline_mode<synchronous>, transform_indices = @transform_1, window_bounds = array<i64: 32, 96>}, {pipeline_mode = #tpu.pipeline_mode<synchronous>, transform_indices = @transform_2, window_bounds = array<i64: 32, 32>}, {pipeline_mode = #tpu.pipeline_mode<synchronous>, transform_indices = @transform_3, window_bounds = array<i64: 32, 32>}, {pipeline_mode = #tpu.pipeline_mode<synchronous>, transform_indices = @transform_4, window_bounds = array<i64: 6, 32>}, {pipeline_mode = #tpu.pipeline_mode<synchronous>, transform_indices = @transform_5, window_bounds = array<i64: 16, 32>}]} {
    %c0 = arith.constant 0 : index
    %c0_0 = arith.constant 0 : index
    %0 = vector.load %arg1[%c0, %c0_0] : memref<16x32xf32, #tpu.memory_space<vmem>>, vector<16x32xf32>
    %c0_1 = arith.constant 0 : index
    %c0_2 = arith.constant 0 : index
    %1 = vector.load %arg5[%c0_1, %c0_2] : memref<6x32xf32, #tpu.memory_space<vmem>>, vector<1x32xf32>
    %c1 = arith.constant 1 : index
    %c0_3 = arith.constant 0 : index
    %2 = vector.load %arg5[%c1, %c0_3] : memref<6x32xf32, #tpu.memory_space<vmem>>, vector<1x32xf32>
    %c2 = arith.constant 2 : index
    %c0_4 = arith.constant 0 : index
    %3 = vector.load %arg5[%c2, %c0_4] : memref<6x32xf32, #tpu.memory_space<vmem>>, vector<1x32xf32>
    %c3 = arith.constant 3 : index
    %c0_5 = arith.constant 0 : index
    %4 = vector.load %arg5[%c3, %c0_5] : memref<6x32xf32, #tpu.memory_space<vmem>>, vector<1x32xf32>
    %c4 = arith.constant 4 : index
    %c0_6 = arith.constant 0 : index
    %5 = vector.load %arg5[%c4, %c0_6] : memref<6x32xf32, #tpu.memory_space<vmem>>, vector<1x32xf32>
    %c5 = arith.constant 5 : index
    %c0_7 = arith.constant 0 : index
    %6 = vector.load %arg5[%c5, %c0_7] : memref<6x32xf32, #tpu.memory_space<vmem>>, vector<1x32xf32>
    %cst = arith.constant dense<0.000000e+00> : vector<16xf32>
    %7 = vector.multi_reduction <add>, %0, %cst [1] : vector<16x32xf32> to vector<16xf32>
    %8 = vector.shape_cast %7 : vector<16xf32> to vector<16x1xf32>
    %cst_8 = arith.constant 3.200000e+01 : f32
    %9 = vector.broadcast %cst_8 : f32 to vector<16x1xf32>
    %10 = arith.divf %8, %9 : vector<16x1xf32>
    %11 = vector.broadcast %10 : vector<16x1xf32> to vector<16x32xf32>
    %12 = arith.subf %0, %11 : vector<16x32xf32>
    %13 = arith.mulf %12, %12 : vector<16x32xf32>
    %cst_9 = arith.constant dense<0.000000e+00> : vector<16xf32>
    %14 = vector.multi_reduction <add>, %13, %cst_9 [1] : vector<16x32xf32> to vector<16xf32>
    %15 = vector.shape_cast %14 : vector<16xf32> to vector<16x1xf32>
    %cst_10 = arith.constant 3.200000e+01 : f32
    %16 = vector.broadcast %cst_10 : f32 to vector<16x1xf32>
    %17 = arith.divf %15, %16 : vector<16x1xf32>
    %18 = vector.broadcast %10 : vector<16x1xf32> to vector<16x32xf32>
    %19 = arith.subf %0, %18 : vector<16x32xf32>
    %cst_11 = arith.constant 9.99999974E-6 : f32
    %20 = vector.broadcast %cst_11 : f32 to vector<16x1xf32>
    %21 = arith.addf %17, %20 : vector<16x1xf32>
    %22 = math.rsqrt %21 : vector<16x1xf32>
    %23 = vector.broadcast %22 : vector<16x1xf32> to vector<16x32xf32>
    %24 = arith.mulf %19, %23 : vector<16x32xf32>
    %25 = vector.broadcast %1 : vector<1x32xf32> to vector<16x32xf32>
    %26 = arith.mulf %24, %25 : vector<16x32xf32>
    %27 = vector.broadcast %2 : vector<1x32xf32> to vector<16x32xf32>
    %28 = arith.addf %26, %27 : vector<16x32xf32>
    %c0_12 = arith.constant 0 : index
    %c0_13 = arith.constant 0 : index
    %29 = vector.load %arg2[%c0_12, %c0_13] : memref<32x96xf32, #tpu.memory_space<vmem>>, vector<32x96xf32>
    %cst_14 = arith.constant dense<0.000000e+00> : vector<16x96xf32>
    %30 = tpu.matmul %28, %29, %cst_14 {dimension_numbers = #tpu.dot_dimension_numbers<[1], [0], [0], [1], [0, 0, 1, 1], [], []>, precision = #tpu.contract_precision<fp32>} : vector<16x32xf32>, vector<32x96xf32>, vector<16x96xf32> -> vector<16x96xf32>
    %31 = vector.extract_strided_slice %30 {offsets = [0, 0], sizes = [16, 32], strides = [1, 1]} : vector<16x96xf32> to vector<16x32xf32>
    %32 = vector.shape_cast %31 : vector<16x32xf32> to vector<2x8x4x8xf32>
    %33 = tpu.transpose %32, [0, 2, 1, 3] : vector<2x8x4x8xf32> -> vector<2x4x8x8xf32>
    %34 = vector.shape_cast %33 : vector<2x4x8x8xf32> to vector<8x8x8xf32>
    %35 = vector.extract_strided_slice %30 {offsets = [0, 32], sizes = [16, 32], strides = [1, 1]} : vector<16x96xf32> to vector<16x32xf32>
    %36 = vector.shape_cast %35 : vector<16x32xf32> to vector<2x8x4x8xf32>
    %37 = tpu.transpose %36, [0, 2, 1, 3] : vector<2x8x4x8xf32> -> vector<2x4x8x8xf32>
    %38 = vector.shape_cast %37 : vector<2x4x8x8xf32> to vector<8x8x8xf32>
    %39 = vector.extract_strided_slice %30 {offsets = [0, 64], sizes = [16, 32], strides = [1, 1]} : vector<16x96xf32> to vector<16x32xf32>
    %40 = vector.shape_cast %39 : vector<16x32xf32> to vector<2x8x4x8xf32>
    %41 = tpu.transpose %40, [0, 2, 1, 3] : vector<2x8x4x8xf32> -> vector<2x4x8x8xf32>
    %42 = vector.shape_cast %41 : vector<2x4x8x8xf32> to vector<8x8x8xf32>
    "tpu.trace_start"() <{level = 10 : i32, message = "ntd,nsd->nts"}> : () -> ()
    %cst_15 = arith.constant dense<0.000000e+00> : vector<8x8x8xf32>
    %43 = tpu.matmul %34, %38, %cst_15 {dimension_numbers = #tpu.dot_dimension_numbers<[2], [2], [1], [1], [0, 0, 0, 1, 1, 1], [0], [0]>, precision = #tpu.contract_precision<fp32>} : vector<8x8x8xf32>, vector<8x8x8xf32>, vector<8x8x8xf32> -> vector<8x8x8xf32>
    "tpu.trace_stop"() : () -> ()
    %cst_16 = arith.constant dense<0xFF800000> : vector<8x8xf32>
    %44 = vector.multi_reduction <maximumf>, %43, %cst_16 [2] : vector<8x8x8xf32> to vector<8x8xf32>
    %45 = vector.shape_cast %44 : vector<8x8xf32> to vector<8x8x1xf32>
    %46 = vector.broadcast %45 : vector<8x8x1xf32> to vector<8x8x8xf32>
    %47 = arith.subf %43, %46 : vector<8x8x8xf32>
    %48 = math.exp %47 : vector<8x8x8xf32>
    %cst_17 = arith.constant dense<0.000000e+00> : vector<8x8xf32>
    %49 = vector.multi_reduction <add>, %48, %cst_17 [2] : vector<8x8x8xf32> to vector<8x8xf32>
    %50 = vector.shape_cast %49 : vector<8x8xf32> to vector<8x8x1xf32>
    %51 = vector.broadcast %50 : vector<8x8x1xf32> to vector<8x8x8xf32>
    %52 = arith.divf %48, %51 : vector<8x8x8xf32>
    "tpu.trace_start"() <{level = 10 : i32, message = "nts,nsd->ntd"}> : () -> ()
    %cst_18 = arith.constant dense<0.000000e+00> : vector<8x8x8xf32>
    %53 = tpu.matmul %52, %42, %cst_18 {dimension_numbers = #tpu.dot_dimension_numbers<[2], [1], [1], [2], [0, 0, 0, 1, 1, 2], [0], [0]>, precision = #tpu.contract_precision<fp32>} : vector<8x8x8xf32>, vector<8x8x8xf32>, vector<8x8x8xf32> -> vector<8x8x8xf32>
    "tpu.trace_stop"() : () -> ()
    %54 = vector.shape_cast %53 : vector<8x8x8xf32> to vector<2x4x8x8xf32>
    %55 = tpu.transpose %54, [0, 2, 1, 3] : vector<2x4x8x8xf32> -> vector<2x8x4x8xf32>
    %56 = vector.shape_cast %55 : vector<2x8x4x8xf32> to vector<16x32xf32>
    %57 = arith.addf %28, %56 : vector<16x32xf32>
    %cst_19 = arith.constant dense<0.000000e+00> : vector<16xf32>
    %58 = vector.multi_reduction <add>, %57, %cst_19 [1] : vector<16x32xf32> to vector<16xf32>
    %59 = vector.shape_cast %58 : vector<16xf32> to vector<16x1xf32>
    %cst_20 = arith.constant 3.200000e+01 : f32
    %60 = vector.broadcast %cst_20 : f32 to vector<16x1xf32>
    %61 = arith.divf %59, %60 : vector<16x1xf32>
    %62 = vector.broadcast %61 : vector<16x1xf32> to vector<16x32xf32>
    %63 = arith.subf %57, %62 : vector<16x32xf32>
    %64 = arith.mulf %63, %63 : vector<16x32xf32>
    %cst_21 = arith.constant dense<0.000000e+00> : vector<16xf32>
    %65 = vector.multi_reduction <add>, %64, %cst_21 [1] : vector<16x32xf32> to vector<16xf32>
    %66 = vector.shape_cast %65 : vector<16xf32> to vector<16x1xf32>
    %cst_22 = arith.constant 3.200000e+01 : f32
    %67 = vector.broadcast %cst_22 : f32 to vector<16x1xf32>
    %68 = arith.divf %66, %67 : vector<16x1xf32>
    %69 = vector.broadcast %61 : vector<16x1xf32> to vector<16x32xf32>
    %70 = arith.subf %57, %69 : vector<16x32xf32>
    %cst_23 = arith.constant 9.99999974E-6 : f32
    %71 = vector.broadcast %cst_23 : f32 to vector<16x1xf32>
    %72 = arith.addf %68, %71 : vector<16x1xf32>
    %73 = math.rsqrt %72 : vector<16x1xf32>
    %74 = vector.broadcast %73 : vector<16x1xf32> to vector<16x32xf32>
    %75 = arith.mulf %70, %74 : vector<16x32xf32>
    %76 = vector.broadcast %3 : vector<1x32xf32> to vector<16x32xf32>
    %77 = arith.mulf %75, %76 : vector<16x32xf32>
    %78 = vector.broadcast %4 : vector<1x32xf32> to vector<16x32xf32>
    %79 = arith.addf %77, %78 : vector<16x32xf32>
    %c0_24 = arith.constant 0 : index
    %c0_25 = arith.constant 0 : index
    %80 = vector.load %arg3[%c0_24, %c0_25] : memref<32x32xf32, #tpu.memory_space<vmem>>, vector<32x32xf32>
    %cst_26 = arith.constant dense<0.000000e+00> : vector<16x32xf32>
    %81 = tpu.matmul %79, %80, %cst_26 {dimension_numbers = #tpu.dot_dimension_numbers<[1], [0], [0], [1], [0, 0, 1, 1], [], []>, precision = #tpu.contract_precision<fp32>} : vector<16x32xf32>, vector<32x32xf32>, vector<16x32xf32> -> vector<16x32xf32>
    %82 = vector.broadcast %5 : vector<1x32xf32> to vector<16x32xf32>
    %83 = arith.addf %81, %82 : vector<16x32xf32>
    %cst_27 = arith.constant 0.000000e+00 : f32
    %84 = vector.broadcast %cst_27 : f32 to vector<16x32xf32>
    %85 = arith.maximumf %83, %84 : vector<16x32xf32>
    %c0_28 = arith.constant 0 : index
    %c0_29 = arith.constant 0 : index
    %86 = vector.load %arg4[%c0_28, %c0_29] : memref<32x32xf32, #tpu.memory_space<vmem>>, vector<32x32xf32>
    %cst_30 = arith.constant dense<0.000000e+00> : vector<16x32xf32>
    %87 = tpu.matmul %85, %86, %cst_30 {dimension_numbers = #tpu.dot_dimension_numbers<[1], [0], [0], [1], [0, 0, 1, 1], [], []>, precision = #tpu.contract_precision<fp32>} : vector<16x32xf32>, vector<32x32xf32>, vector<16x32xf32> -> vector<16x32xf32>
    %88 = vector.broadcast %6 : vector<1x32xf32> to vector<16x32xf32>
    %89 = arith.addf %87, %88 : vector<16x32xf32>
    %90 = arith.addf %79, %89 : vector<16x32xf32>
    %c0_31 = arith.constant 0 : index
    %c0_32 = arith.constant 0 : index
    %91 = vector.load %arg6[%c0_31, %c0_32] : memref<16x32xf32, #tpu.memory_space<vmem>>, vector<16x32xf32>
    tpu.vector_store %arg6[%c0_31, %c0_32], %90 {strides = array<i32>} : memref<16x32xf32, #tpu.memory_space<vmem>>, vector<16x32xf32>,
    return
  }
  func.func @transform_0(%arg0: i32) -> (i32, i32) {
    %c0_i32 = arith.constant 0 : i32
    %c0_i32_0 = arith.constant 0 : i32
    %c0_i32_1 = arith.constant 0 : i32
    return %c0_i32, %c0_i32_0 : i32, i32
  }
  func.func @transform_1(%arg0: i32) -> (i32, i32) {
    %c0_i32 = arith.constant 0 : i32
    %c0_i32_0 = arith.constant 0 : i32
    %c0_i32_1 = arith.constant 0 : i32
    return %c0_i32, %c0_i32_0 : i32, i32
  }
  func.func @transform_2(%arg0: i32) -> (i32, i32) {
    %c0_i32 = arith.constant 0 : i32
    %c0_i32_0 = arith.constant 0 : i32
    %c0_i32_1 = arith.constant 0 : i32
    return %c0_i32, %c0_i32_0 : i32, i32
  }
  func.func @transform_3(%arg0: i32) -> (i32, i32) {
    %c0_i32 = arith.constant 0 : i32
    %c0_i32_0 = arith.constant 0 : i32
    %c0_i32_1 = arith.constant 0 : i32
    return %c0_i32, %c0_i32_0 : i32, i32
  }
  func.func @transform_4(%arg0: i32) -> (i32, i32) {
    %c0_i32 = arith.constant 0 : i32
    %c0_i32_0 = arith.constant 0 : i32
    %c0_i32_1 = arith.constant 0 : i32
    return %c0_i32, %c0_i32_0 : i32, i32
  }
  func.func @transform_5(%arg0: i32) -> (i32, i32) {
    %c0_i32 = arith.constant 0 : i32
    %c0_i32_0 = arith.constant 0 : i32
    %c0_i32_1 = arith.constant 0 : i32
    return %c0_i32, %c0_i32_0 : i32, i32
  }
}

</mosaic_0001>

<bundles_post_ra>
// kernel: tattention_pallas.1
= control target key start
LH: loop header
LB: loop body
LE: loop exit
PB: predicated region body
PF: predicated region fallthrough
CT: control target
= control target key end

     0   :  { %vm29_vm0 = vcmask 261120   ;;  %s12746_s0 = inlined_call_operand.vmem [shape: f32[16,32], index: 0, kind: input, shape index: {}]   ;;  %s12747_s1 = inlined_call_operand.vmem [shape: f32[32,96], index: 1, kind: input, shape index: {}]   ;;  %s12748_s2 = inlined_call_operand.vmem [shape: f32[32,32], index: 2, kind: input, shape index: {}]   ;;  %s12749_s3 = inlined_call_operand.vmem [shape: f32[32,32], index: 3, kind: input, shape index: {}]   ;;  %s12750_s4 = inlined_call_operand.vmem [shape: f32[6,32], index: 4, kind: input, shape index: {}]   ;;  %s12751_s5 = inlined_call_operand.hbm [shape: f32[16,32], index: 5, kind: output, shape index: {}]  }
   0x1   :  { %v21_v0 = vld [vmem:[%s12746_s0] sm:$0xff]  ;;  %v22_v1 = vld [vmem:[%s12746_s0 + $0x8] sm:$0xff] }
   0x2   :  { %10 = vsyncpa [#allocation3], 0  ;;  %v30_v2 = vsel %vm29_vm0, %v21_v0, 0.0  ;;  %v33_v3 = vsel %vm29_vm0, %v22_v1, 0.0  ;;  %v69_v14 = vld [vmem:[%s12747_s1] sm:$0xff]  ;;  %v70_v15 = vld [vmem:[%s12747_s1 + $0x8] sm:$0xff] }
   0x3   :  { %31 = vadd.xlane.f32.xlu0 %v30_v2  ;;  %v71_v16 = vld [vmem:[%s12747_s1 + $0x10] sm:$0xff]  ;;  %v80_v17 = vand.u32 4294901760, %v69_v14  ;;  %v83_v18 = vand.u32 4294901760, %v70_v15  ;;  %v72_v19 = vld [vmem:[%s12747_s1 + $0x18] sm:$0xff]  ;;  %v10238_v53 = vld [vmem:[%s12750_s4] ss:$0 sm:$0xff] }
   0x4   :  { %v86_v20 = vand.u32 4294901760, %v71_v16  ;;  %v89_v21 = vand.u32 4294901760, %v72_v19  ;;  %v10239_v55 = vld [vmem:[%s12750_s4 + $0x1] ss:$0 sm:$0xff]  ;;  %s11654_s7 = smov 112   ;;  %s11655_s8 = smov 120  }
   0x5   :  { %v11720_v22 = vpack.c.bf16 %v83_v18, %v80_v17  ;;  %v170_v24 = vsub.f32 %v69_v14, %v80_v17  ;;  %v177_v25 = vsub.f32 %v70_v15, %v83_v18  ;;  %s11656_s9 = smov 104   ;;  %s11657_s10 = smov 96   ;;  %v632_v14 = vlaneseq }
   0x6   :  { %v11722_v23 = vpack.c.bf16 %v89_v21, %v86_v20  ;;  %v184_v30 = vsub.f32 %v71_v16, %v86_v20  ;;  %v191_v31 = vsub.f32 %v72_v19, %v89_v21  ;;  %v11659_v15 = vmov 1934713408   ;;  %s11662_s11 = smov 64   ;;  %s11663_s12 = smov 8  }
   0x7   :  { %34 = vadd.xlane.f32.xlu0 %v33_v3  ;;  %11239 = vmatprep.subr.bf16.mxu0 %v11720_v22  ;;  %v171_v26 = vand.u32 4294901760, %v170_v24  ;;  %v178_v27 = vand.u32 4294901760, %v177_v25  ;;  %v11254_v42 = vpack.c.bf16 %v177_v25, %v170_v24  ;;  %v662_v16 = vunpack.c.l.s4 %v11659_v15  ;;  %s11664_s13 = smov 16   ;;  %s11665_s14 = smov 24  }
   0x8   :  { %11241 = vmatpush3.bf16.msra.mxu0 %v11720_v22  ;;  %v185_v34 = vand.u32 4294901760, %v184_v30  ;;  %v192_v35 = vand.u32 4294901760, %v191_v31  ;;  %v11258_v43 = vpack.c.bf16 %v191_v31, %v184_v30  ;;  %v633_v18 = vshrl.u32 %v632_v14, 7 }
   0x9   :  { %11243 = vmatprep.subr.bf16.mxu0 %v11722_v23  ;;  %v172_v28 = vsub.f32 %v170_v24, %v171_v26  ;;  %v179_v29 = vsub.f32 %v177_v25, %v178_v27  ;;  %v11270_v44 = vpack.c.bf16 %v178_v27, %v171_v26  ;;  %v663_v21 = vunpack.c.0.s8 %v662_v16 }
   0xa   :  { %v186_v37 = vsub.f32 %v184_v30, %v185_v34  ;;  %v193_v38 = vsub.f32 %v191_v31, %v192_v35  ;;  %v11274_v45 = vpack.c.bf16 %v192_v35, %v185_v34  ;;  %vm11661_vm1 = vmmov 0  }
   0xb   :  { %v173_v32 = vand.u32 4294901760, %v172_v28  ;;  %v180_v33 = vand.u32 4294901760, %v179_v29  ;;  %v11784_v28 = vsub.s32 %v663_v21, %v633_v18  ;;  %vm1491_vm2 = vcmask 64512  }
   0xc   :  { %11245 = vmatpush3.bf16.msra.mxu0 %v11722_v23  ;;  %v187_v39 = vand.u32 4294901760, %v186_v37  ;;  %v194_v40 = vand.u32 4294901760, %v193_v38  ;;  %vm9086_vm3 = vcmask 130048   ;;  %vm9089_vm4 = vcmask 195584  }
   0xd   :  { %v11246_v36 = vpack.c.bf16 %v180_v33, %v173_v32 }
   0xe   :  { %v11250_v41 = vpack.c.bf16 %v194_v40, %v187_v39 }
   0xf   :  { %11247 = vmatprep.subr.bf16.mxu0 %v11246_v36 }
  0x90   :  { %v32_v4 = vpop.xlane.xlu0 %31 }
  0x91   :  { %v37_v5 = vmul.f32 0.03125, %v32_v4 }
  0x93   :  { %v39_v6 = vsub.f32 %v21_v0, %v37_v5 }
  0x94   :  { %v35_v7 = vpop.xlane.xlu0 %34 }
  0x95   :  { %v38_v8 = vmul.f32 0.03125, %v35_v7  ;;  %v41_v9 = vmul.f32 %v39_v6, %v39_v6 }
  0x97   :  { %v40_v10 = vsub.f32 %v22_v1, %v38_v8  ;;  %v43_v11 = vsel %vm29_vm0, %v41_v9, 0.0 }
  0x98   :  { %44 = vadd.xlane.f32.xlu1 %v43_v11 }
  0x99   :  { %v42_v12 = vmul.f32 %v40_v10, %v40_v10 }
  0x9b   :  { %v46_v13 = vsel %vm29_vm0, %v42_v12, 0.0  ;;  %v11658_v12 = vmov 1983009808  }
  0x9c   :  { %47 = vadd.xlane.f32.xlu1 %v46_v13  ;;  %v630_v13 = vunpack.c.l.s4 %v11658_v12 }
  0x9e   :  { %v631_v17 = vunpack.c.0.s8 %v630_v13 }
 0x125   :  { %v45_v46 = vpop.xlane.xlu1 %44 }
 0x126   :  { %v49_v47 = vmul.f32 0.03125, %v45_v46 }
 0x128   :  { %v51_v48 = vadd.f32 1e-05, %v49_v47 }
 0x129   :  { %v48_v49 = vpop.xlane.xlu1 %47 }
 0x12a   :  { %11590 = vrsqrt.f32 %v51_v48  ;;  %v50_v50 = vmul.f32 0.03125, %v48_v49 }
 0x12c   :  { %v52_v51 = vadd.f32 1e-05, %v50_v50 }
 0x12e   :  { %11592 = vrsqrt.f32 %v52_v51 }
 0x134   :  { %v11591_v52 = vpop.eup %11590 }
 0x135   :  { %v55_v54 = vmul.f32 %v11591_v52, %v39_v6 }
 0x137   :  { %v61_v56 = vmul.f32 %v10238_v53, %v55_v54 }
 0x138   :  { %v11593_v57 = vpop.eup %11592 }
 0x139   :  { %v56_v58 = vmul.f32 %v11593_v57, %v40_v10  ;;  %v11734_v59 = vadd.f32 %v10239_v55, %v61_v56 }
 0x13b   :  { %v62_v60 = vmul.f32 %v10238_v53, %v56_v58  ;;  %v74_v61 = vsel %vm29_vm0, %v11734_v59, 0 }
 0x13c   :  { %v148_v62 = vand.u32 4294901760, %v74_v61 }
 0x13d   :  { %v11738_v63 = vadd.f32 %v10239_v55, %v62_v60 }
 0x13e   :  { %v149_v0 = vsub.f32 %v74_v61, %v148_v62 }
 0x13f   :  { %v77_v1 = vsel %vm29_vm0, %v11738_v63, 0 }
 0x140   :  { %v150_v2 = vand.u32 4294901760, %v149_v0  ;;  %v158_v3 = vand.u32 4294901760, %v77_v1 }
 0x142   :  { %v151_v4 = vsub.f32 %v149_v0, %v150_v2  ;;  %v159_v5 = vsub.f32 %v77_v1, %v158_v3 }
 0x144   :  { %v152_v6 = vand.u32 4294901760, %v151_v4  ;;  %v160_v7 = vand.u32 4294901760, %v159_v5 }
 0x146   :  { %10568 = vmatprep.mubr.f32.mxu0 %v152_v6  ;;  %v161_v8 = vsub.f32 %v159_v5, %v160_v7 }
 0x148   :  { %v162_v9 = vand.u32 4294901760, %v161_v8 }
 0x14a   :  { %10569 = vmatmul.mubr.f32.vlgmr.msra.gmra.mrb[0].mxu0 %v162_v9 }
 0x14b   :  { %11249 = vmatpush3.bf16.msra.mxu0 %v11246_v36  ;;  %10579 = vmatprep.mubr.f32.mxu0 %v148_v62 }
 0x14c   :  { %11251 = vmatprep.subr.bf16.mxu0 %v11250_v41 }
 0x14f   :  { %11253 = vmatpush3.bf16.msra.mxu0 %v11250_v41  ;;  %v11660_v41 = vmov 0.0  }
 0x150   :  { %11255 = vmatprep.subr.bf16.mxu0 %v11254_v42  ;;  %10626 = vmatprep.subr.mxu1 %v11660_v41 }
 0x151   :  { %10628 = vmatprep.mubr.msk.f32.mxu1 %vm11661_vm1, %v11660_v41 }
 0x152   :  { %10580 = vmatmul.mubr.f32.vlgmr.msra.gmra.mrb[0].mxu0 %v158_v3 }
 0x153   :  { %11257 = vmatpush3.bf16.msra.mxu0 %v11254_v42  ;;  %10590 = vmatprep.mubr.f32.mxu0 %v149_v0 }
 0x154   :  { %11259 = vmatprep.subr.bf16.mxu0 %v11258_v43 }
 0x157   :  { %11261 = vmatpush3.bf16.msra.mxu0 %v11258_v43 }
 0x158   :  { %11263 = vmatprep.subr.bf16.mxu0 %v11720_v22 }
 0x15a   :  { %10591 = vmatmul.mubr.f32.vlgmr.msra.gmra.mrb[0].mxu0 %v159_v5 }
 0x15b   :  { %11265 = vmatpush3.bf16.msra.mxu0 %v11720_v22  ;;  %10601 = vmatprep.mubr.f32.mxu0 %v150_v2 }
 0x15c   :  { %11267 = vmatprep.subr.bf16.mxu0 %v11722_v23 }
 0x15f   :  { %11269 = vmatpush3.bf16.msra.mxu0 %v11722_v23 }
 0x160   :  { %11271 = vmatprep.subr.bf16.mxu0 %v11270_v44 }
 0x162   :  { %10602 = vmatmul.mubr.f32.vlgmr.msra.gmra.mrb[0].mxu0 %v160_v7 }
 0x163   :  { %11273 = vmatpush3.bf16.msra.mxu0 %v11270_v44  ;;  %10612 = vmatprep.mubr.f32.mxu0 %v148_v62 }
 0x164   :  { %11275 = vmatprep.subr.bf16.mxu0 %v11274_v45 }
 0x167   :  { %11277 = vmatpush3.bf16.msra.mxu0 %v11274_v45 }
 0x168   :  { %11279 = vmatprep.subr.bf16.mxu0 %v11720_v22 }
 0x16a   :  { %10613 = vmatmul.mubr.f32.vlgmr.msra.gmra.mrb[0].mxu0 %v158_v3 }
 0x16b   :  { %11281 = vmatpush3.bf16.msra.mxu0 %v11720_v22  ;;  %10623 = vmatprep.mubr.f32.mxu0 %v148_v62  ;;  %v11769_v22 = vsub.s32 %v631_v17, %v633_v18 }
 0x16c   :  { %11283 = vmatprep.subr.bf16.mxu0 %v11722_v23 }
 0x16f   :  { %11285 = vmatpush3.bf16.msra.mxu0 %v11722_v23 }
 0x170   :  { %10686 = vmatprep.subr.mxu0 %v11660_v41 }
 0x172   :  { %10624 = vmatmul.mubr.f32.vlgmr.msra.gmra.mrb[0].mxu0 %v158_v3 }
 0x173   :  { %10688 = vmatprep.mubr.msk.f32.mxu0 %vm11661_vm1, %v11660_v41 }
 0x245   :  { %v11750_v10 = vpop.f32.mrb[0].mxu0 }
 0x246   :  { %v11752_v11 = vpop.f32.mrb[1].mxu0 }
 0x247   :  { %615 = vrot.lane.b32.xlu1 %v11752_v11, %s11654_s7  ;;  %609 = vrot.lane.b32.xlu0 %v11752_v11, %s11655_s8 }
 0x24b   :  { %621 = vrot.lane.b32.xlu1 %v11752_v11, %s11656_s9 }
 0x24f   :  { %899 = vrot.lane.b32.xlu1 %v11752_v11, %s11657_s10 }
 0x2b9   :  { %v11761_v19 = vpop.permute.xlu1 %615  ;;  %v11763_v20 = vpop.permute.xlu0 %609 }
 0x2ba   :  { %907 = vrot.lane.b32.xlu1 %v11761_v19, %s11657_s10  ;;  %903 = vrot.lane.b32.xlu0 %v11763_v20, %s11657_s10  ;;  %v627_v23 = vcombine.low %v11752_v11, %v11761_v19  ;;  %v628_v24 = vcombine.high %v11752_v11, %v11761_v19 }
 0x2bc   :  { %v635_v29 = vrot.slane %v627_v23, %v11769_v22  ;;  %v642_v30 = vrot.slane %v628_v24, %v11769_v22 }
 0x2bd   :  { %v11775_v25 = vpop.permute.xlu1 %621 }
 0x2be   :  { %v643_v26 = vcombine.low %v11763_v20, %v11775_v25  ;;  %v644_v27 = vcombine.high %v11763_v20, %v11775_v25  ;;  %611 = vrot.lane.b32.xlu1 %v11750_v10, %s11655_s8  ;;  %911 = vrot.lane.b32.xlu0 %v11775_v25, %s11657_s10 }
 0x2c0   :  { %v651_v31 = vrot.slane %v643_v26, %v11769_v22  ;;  %v658_v32 = vrot.slane %v644_v27, %v11769_v22 }
 0x2c1   :  { %v900_v57 = vpop.permute.xlu1 %899 }
 0x2c2   :  { %v659_v33 = vcombine.low %v635_v29, %v651_v31  ;;  %v660_v34 = vcombine.high %v635_v29, %v651_v31  ;;  %v675_v35 = vcombine.low %v642_v30, %v658_v32  ;;  %v676_v36 = vcombine.high %v642_v30, %v658_v32  ;;  %623 = vrot.lane.b32.xlu1 %v11750_v10, %s11656_s9 }
 0x2c3   :  { %617 = vrot.lane.b32.xlu0 %v11750_v10, %s11654_s7 }
 0x2c4   :  { %v667_v37 = vrot.slane %v659_v33, %v11784_v28  ;;  %v674_v38 = vrot.slane %v660_v34, %v11784_v28  ;;  %v683_v39 = vrot.slane %v675_v35, %v11784_v28  ;;  %v690_v40 = vrot.slane %v676_v36, %v11784_v28 }
 0x2c6   :  { %v763_v42 = vcombine.low %v667_v37, %v674_v38  ;;  %v10240_v43 = vcombine.high %v667_v37, %v674_v38  ;;  %v779_v44 = vcombine.low %v683_v39, %v690_v40  ;;  %v10241_v45 = vcombine.high %v683_v39, %v690_v40 }
 0x2c7   :  { %901 = vrot.lane.b32.xlu0 %v11750_v10, %s11657_s10 }
 0x2c8   :  { %v770_v46 = vrot.slane %v763_v42, %v11769_v22  ;;  %v778_v47 = vrot.slane %v10240_v43, %v11769_v22  ;;  %v786_v48 = vrot.slane %v779_v44, %v11769_v22  ;;  %v794_v49 = vrot.slane %v10241_v45, %v11769_v22 }
 0x2ca   :  { %v796_v50 = vcombine.high %v770_v46, %v778_v47  ;;  %v812_v51 = vcombine.high %v786_v48, %v794_v49  ;;  %v795_v55 = vcombine.low %v770_v46, %v778_v47  ;;  %v811_v56 = vcombine.low %v786_v48, %v794_v49 }
 0x2cc   :  { %v11811_v52 = vrot.slane %v796_v50, %v11784_v28  ;;  %v11814_v53 = vrot.slane %v812_v51, %v11784_v28  ;;  %v11819_v58 = vrot.slane %v795_v55, %v11784_v28  ;;  %v11822_v60 = vrot.slane %v811_v56, %v11784_v28 }
 0x2ce   :  { %v830_v54 = vcombine.high %v11811_v52, %v11814_v53  ;;  %v827_v0 = vcombine.low %v11819_v58, %v11822_v60  ;;  %v829_v1 = vcombine.low %v11811_v52, %v11814_v53 }
 0x2d0   :  { %v1493_v8 = vsel %vm1491_vm2, %v827_v0, 0  ;;  %v2397_v9 = vsel %vm1491_vm2, %v829_v1, 0 }
 0x2d1   :  { %v11846_v26 = vand.u32 4294901760, %v1493_v8  ;;  %v11848_v27 = vand.u32 4294901760, %v2397_v9 }
 0x2d3   :  { %v11855_v37 = vsub.f32 %v1493_v8, %v11846_v26  ;;  %v11858_v38 = vsub.f32 %v2397_v9, %v11848_v27 }
 0x2d5   :  { %v1566_v48 = vand.u32 4294901760, %v11855_v37  ;;  %v2470_v49 = vand.u32 4294901760, %v11858_v38 }
 0x32c   :  { %v908_v61 = vpop.permute.xlu1 %907  ;;  %v904_v62 = vpop.permute.xlu0 %903 }
 0x32d   :  { %v923_v2 = vcombine.low %v900_v57, %v908_v61  ;;  %v924_v3 = vcombine.high %v900_v57, %v908_v61 }
 0x32f   :  { %v931_v12 = vrot.slane %v923_v2, %v11769_v22  ;;  %v938_v13 = vrot.slane %v924_v3, %v11769_v22  ;;  %v1567_v2 = vsub.f32 %v11855_v37, %v1566_v48  ;;  %v2471_v3 = vsub.f32 %v11858_v38, %v2470_v49 }
 0x330   :  { %v11828_v4 = vpop.permute.xlu1 %611  ;;  %v912_v5 = vpop.permute.xlu0 %911 }
 0x331   :  { %v939_v6 = vcombine.low %v904_v62, %v912_v5  ;;  %v940_v7 = vcombine.high %v904_v62, %v912_v5  ;;  %905 = vrot.lane.b32.xlu1 %v11828_v4, %s11657_s10  ;;  %v1568_v9 = vand.u32 4294901760, %v1567_v2 }
 0x333   :  { %v947_v14 = vrot.slane %v939_v6, %v11769_v22  ;;  %v954_v15 = vrot.slane %v940_v7, %v11769_v22 }
 0x334   :  { %v11838_v16 = vpop.permute.xlu1 %623 }
 0x335   :  { %v955_v17 = vcombine.low %v931_v12, %v947_v14  ;;  %v956_v18 = vcombine.high %v931_v12, %v947_v14  ;;  %v971_v21 = vcombine.low %v938_v13, %v954_v15  ;;  %v972_v23 = vcombine.high %v938_v13, %v954_v15  ;;  %v11840_v24 = vpop.permute.xlu0 %617  ;;  %913 = vrot.lane.b32.xlu1 %v11838_v16, %s11657_s10 }
 0x336   :  { %909 = vrot.lane.b32.xlu0 %v11840_v24, %s11657_s10  ;;  %v2472_v12 = vand.u32 4294901760, %v2471_v3  ;;  %s11666_s10 = smov [#allocation2]  }
 0x337   :  { %v963_v29 = vrot.slane %v955_v17, %v11784_v28  ;;  %v970_v30 = vrot.slane %v956_v18, %v11784_v28  ;;  %v979_v31 = vrot.slane %v971_v21, %v11784_v28  ;;  %v986_v32 = vrot.slane %v972_v23, %v11784_v28 }
 0x338   :  { %v828_v23 = vcombine.high %v11819_v58, %v11822_v60 }
 0x339   :  { %v1059_v33 = vcombine.low %v963_v29, %v970_v30  ;;  %v10244_v34 = vcombine.high %v963_v29, %v970_v30  ;;  %v1075_v35 = vcombine.low %v979_v31, %v986_v32  ;;  %v10245_v36 = vcombine.high %v979_v31, %v986_v32 }
 0x33a   :  { %v1945_v30 = vsel %vm1491_vm2, %v828_v23, 0 }
 0x33b   :  { %v1066_v39 = vrot.slane %v1059_v33, %v11769_v22  ;;  %v1074_v40 = vrot.slane %v10244_v34, %v11769_v22  ;;  %v1082_v42 = vrot.slane %v1075_v35, %v11769_v22  ;;  %v1090_v43 = vrot.slane %v10245_v36, %v11769_v22 }
 0x33c   :  { %v11913_v32 = vand.u32 4294901760, %v1945_v30 }
 0x33d   :  { %v1091_v44 = vcombine.low %v1066_v39, %v1074_v40  ;;  %v1092_v45 = vcombine.high %v1066_v39, %v1074_v40  ;;  %v1107_v46 = vcombine.low %v1082_v42, %v1090_v43  ;;  %v1108_v47 = vcombine.high %v1082_v42, %v1090_v43 }
 0x33e   :  { %v2017_v60 = vsub.f32 %v1945_v30, %v11913_v32  ;;  %v695_v40 = vcombine.low %v11750_v10, %v11840_v24  ;;  %v696_v42 = vcombine.high %v11750_v10, %v11840_v24  ;;  %v2849_v43 = vsel %vm1491_vm2, %v830_v54, 0 }
 0x33f   :  { %v1099_v50 = vrot.slane %v1091_v44, %v11784_v28  ;;  %v1115_v51 = vrot.slane %v1107_v46, %v11784_v28  ;;  %v11869_v55 = vrot.slane %v1092_v45, %v11784_v28  ;;  %v11872_v56 = vrot.slane %v1108_v47, %v11784_v28 }
 0x340   :  { %v2018_v34 = vand.u32 4294901760, %v2017_v60  ;;  %v703_v46 = vrot.slane %v695_v40, %v11769_v22  ;;  %v710_v47 = vrot.slane %v696_v42, %v11769_v22  ;;  %v11966_v52 = vand.u32 4294901760, %v2849_v43 }
 0x341   :  { %v1123_v57 = vcombine.low %v1099_v50, %v1115_v51  ;;  %v1125_v61 = vcombine.low %v11869_v55, %v11872_v56  ;;  %v1126_v62 = vcombine.high %v11869_v55, %v11872_v56  ;;  %v1124_v29 = vcombine.high %v1099_v50, %v1115_v51 }
 0x342   :  { %v2019_v36 = vsub.f32 %v2017_v60, %v2018_v34 }
 0x343   :  { %v1496_v0 = vsel %vm1491_vm2, %v1123_v57, 0  ;;  %v2400_v1 = vsel %vm1491_vm2, %v1125_v61, 0  ;;  %v1948_v31 = vsel %vm1491_vm2, %v1124_v29, 0  ;;  %v11972_v57 = vsub.f32 %v2849_v43, %v11966_v52 }
 0x344   :  { %v1499_v5 = vand.u32 4294901760, %v1496_v0  ;;  %v2403_v6 = vand.u32 4294901760, %v2400_v1  ;;  %v1951_v58 = vand.u32 4294901760, %v1948_v31 }
 0x346   :  { %10627 = vmatpush3.xpose.msra.mxu1 %v1499_v5  ;;  %v1576_v7 = vsub.f32 %v1496_v0, %v1499_v5  ;;  %10687 = vmatpush3.xpose.msra.mxu0 %v2403_v6  ;;  %v2480_v8 = vsub.f32 %v2400_v1, %v2403_v6  ;;  %v2028_v33 = vsub.f32 %v1948_v31, %v1951_v58  ;;  %v2922_v1 = vand.u32 4294901760, %v11972_v57 }
 0x347   :  { %10631 = vmatprep.subr.mxu1 %v11660_v41  ;;  %10691 = vmatprep.subr.mxu0 %v11660_v41 }
 0x348   :  { %v1577_v13 = vand.u32 4294901760, %v1576_v7  ;;  %v2481_v14 = vand.u32 4294901760, %v2480_v8  ;;  %v2029_v35 = vand.u32 4294901760, %v2028_v33 }
 0x349   :  { %10629 = vmatmul.mubr.f32.vlgmr.msra.gmra.mrb[0].mxu1 %v1568_v9  ;;  %10689 = vmatmul.mubr.f32.vlgmr.msra.gmra.mrb[2].mxu0 %v2472_v12 }
 0x34a   :  { %v1578_v15 = vsub.f32 %v1576_v7, %v1577_v13  ;;  %v2482_v17 = vsub.f32 %v2480_v8, %v2481_v14  ;;  %10633 = vmatprep.mubr.msk.f32.mxu1 %vm11661_vm1, %v11660_v41  ;;  %10693 = vmatprep.mubr.msk.f32.mxu0 %vm11661_vm1, %v11660_v41 }
 0x34c   :  { %v1579_v18 = vand.u32 4294901760, %v1578_v15  ;;  %v2483_v21 = vand.u32 4294901760, %v2482_v17 }
 0x34e   :  { %10632 = vmatpush3.xpose.msra.mxu1 %v1579_v18  ;;  %10692 = vmatpush3.xpose.msra.mxu0 %v2483_v21 }
 0x34f   :  { %10636 = vmatprep.subr.mxu1 %v11660_v41  ;;  %10696 = vmatprep.subr.mxu0 %v11660_v41 }
 0x351   :  { %10634 = vmatmul.mubr.f32.vlgmr.msra.gmra.mrb[0].mxu1 %v11846_v26  ;;  %10694 = vmatmul.mubr.f32.vlgmr.msra.gmra.mrb[2].mxu0 %v11848_v27 }
 0x352   :  { %10637 = vmatpush3.xpose.msra.mxu1 %v1576_v7  ;;  %10697 = vmatpush3.xpose.msra.mxu0 %v2480_v8  ;;  %v2923_v8 = vsub.f32 %v11972_v57, %v2922_v1 }
 0x353   :  { %10638 = vmatprep.mubr.msk.f32.mxu1 %vm11661_vm1, %v11660_v41  ;;  %10641 = vmatprep.subr.mxu1 %v11660_v41 }
 0x354   :  { %10698 = vmatprep.mubr.msk.f32.mxu0 %vm11661_vm1, %v11660_v41  ;;  %10701 = vmatprep.subr.mxu0 %v11660_v41  ;;  %v2924_v21 = vand.u32 4294901760, %v2923_v8 }
 0x359   :  { %10639 = vmatmul.mubr.f32.vlgmr.msra.gmra.mrb[0].mxu1 %v11855_v37  ;;  %10699 = vmatmul.mubr.f32.vlgmr.msra.gmra.mrb[2].mxu0 %v11858_v38  ;;  %v2030_v37 = vsub.f32 %v2028_v33, %v2029_v35  ;;  %v2020_v38 = vand.u32 4294901760, %v2019_v36 }
 0x35a   :  { %10642 = vmatpush3.xpose.msra.mxu1 %v1499_v5  ;;  %10702 = vmatpush3.xpose.msra.mxu0 %v2403_v6 }
 0x35b   :  { %10643 = vmatprep.mubr.msk.f32.mxu1 %vm11661_vm1, %v11660_v41  ;;  %10646 = vmatprep.subr.mxu1 %v11660_v41  ;;  %v2031_v39 = vand.u32 4294901760, %v2030_v37 }
 0x35c   :  { %10703 = vmatprep.mubr.msk.f32.mxu0 %vm11661_vm1, %v11660_v41  ;;  %10706 = vmatprep.subr.mxu0 %v11660_v41 }
 0x361   :  { %10644 = vmatmul.mubr.f32.vlgmr.msra.gmra.mrb[0].mxu1 %v1566_v48  ;;  %10704 = vmatmul.mubr.f32.vlgmr.msra.gmra.mrb[2].mxu0 %v2470_v49  ;;  %v2852_v48 = vsel %vm1491_vm2, %v1126_v62, 0 }
 0x362   :  { %10647 = vmatpush3.xpose.msra.mxu1 %v1577_v13  ;;  %10707 = vmatpush3.xpose.msra.mxu0 %v2481_v14  ;;  %v11969_v51 = vand.u32 4294901760, %v2852_v48 }
 0x363   :  { %10648 = vmatprep.mubr.msk.f32.mxu1 %vm11661_vm1, %v11660_v41  ;;  %10651 = vmatprep.subr.mxu1 %v11660_v41 }
 0x364   :  { %10708 = vmatprep.mubr.msk.f32.mxu0 %vm11661_vm1, %v11660_v41  ;;  %10711 = vmatprep.subr.mxu0 %v11660_v41  ;;  %v11979_v0 = vsub.f32 %v2852_v48, %v11969_v51 }
 0x366   :  { %v2933_v7 = vand.u32 4294901760, %v11979_v0 }
 0x368   :  { %v2934_v15 = vsub.f32 %v11979_v0, %v2933_v7 }
 0x369   :  { %10649 = vmatmul.mubr.f32.vlgmr.msra.gmra.mrb[0].mxu1 %v11846_v26  ;;  %10709 = vmatmul.mubr.f32.vlgmr.msra.gmra.mrb[2].mxu0 %v11848_v27 }
 0x36a   :  { %10652 = vmatpush3.xpose.msra.mxu1 %v1499_v5  ;;  %10712 = vmatpush3.xpose.msra.mxu0 %v2403_v6  ;;  %v2935_v23 = vand.u32 4294901760, %v2934_v15 }
 0x36b   :  { %10653 = vmatprep.mubr.msk.f32.mxu1 %vm11661_vm1, %v11660_v41  ;;  %10656 = vmatprep.subr.mxu1 %v11660_v41 }
 0x36c   :  { %10713 = vmatprep.mubr.msk.f32.mxu0 %vm11661_vm1, %v11660_v41  ;;  %10746 = vmatprep.subr.mxu0 %v11660_v41 }
 0x371   :  { %10654 = vmatmul.mubr.f32.vlgmr.msra.gmra.mrb[0].mxu1 %v11846_v26  ;;  %10714 = vmatmul.mubr.f32.vlgmr.msra.gmra.mrb[2].mxu0 %v11848_v27  ;;  %v711_v26 = vcombine.low %v11828_v4, %v11838_v16  ;;  %v712_v27 = vcombine.high %v11828_v4, %v11838_v16 }
 0x372   :  { %10657 = vmatpush3.xpose.msra.mxu1 %v1951_v58  ;;  %10658 = vmatprep.mubr.msk.f32.mxu1 %vm11661_vm1, %v11660_v41 }
 0x373   :  { %10661 = vmatprep.subr.mxu1 %v11660_v41  ;;  %10748 = vmatprep.mubr.msk.f32.mxu0 %vm11661_vm1, %v11660_v41  ;;  %v719_v44 = vrot.slane %v711_v26, %v11769_v22  ;;  %v726_v45 = vrot.slane %v712_v27, %v11769_v22 }
 0x375   :  { %10659 = vmatmul.mubr.f32.vlgmr.msra.gmra.mrb[2].mxu1 %v2020_v38  ;;  %v727_v53 = vcombine.low %v703_v46, %v719_v44  ;;  %v728_v54 = vcombine.high %v703_v46, %v719_v44  ;;  %v743_v49 = vcombine.low %v710_v47, %v726_v45  ;;  %v744_v50 = vcombine.high %v710_v47, %v726_v45 }
 0x376   :  { %10662 = vmatpush3.xpose.msra.mxu1 %v2031_v39  ;;  %10663 = vmatprep.mubr.msk.f32.mxu1 %vm11661_vm1, %v11660_v41 }
 0x377   :  { %10666 = vmatprep.subr.mxu1 %v11660_v41  ;;  %v735_v55 = vrot.slane %v727_v53, %v11784_v28  ;;  %v742_v56 = vrot.slane %v728_v54, %v11784_v28  ;;  %v751_v61 = vrot.slane %v743_v49, %v11784_v28  ;;  %v758_v62 = vrot.slane %v744_v50, %v11784_v28 }
 0x379   :  { %v831_v2 = vcombine.low %v735_v55, %v742_v56  ;;  %v10242_v3 = vcombine.high %v735_v55, %v742_v56  ;;  %v847_v5 = vcombine.low %v751_v61, %v758_v62  ;;  %v10243_v6 = vcombine.high %v751_v61, %v758_v62 }
 0x37b   :  { %v11991_v9 = vrot.slane %v831_v2, %v11769_v22  ;;  %v11994_v12 = vrot.slane %v10242_v3, %v11769_v22  ;;  %v11997_v13 = vrot.slane %v847_v5, %v11769_v22  ;;  %v12000_v14 = vrot.slane %v10243_v6, %v11769_v22 }
 0x37d   :  { %10664 = vmatmul.mubr.f32.vlgmr.msra.gmra.mrb[2].mxu1 %v11913_v32  ;;  %v863_v17 = vcombine.low %v11991_v9, %v11994_v12  ;;  %v879_v18 = vcombine.low %v11997_v13, %v12000_v14 }
 0x37e   :  { %10667 = vmatpush3.xpose.msra.mxu1 %v2028_v33  ;;  %10668 = vmatprep.mubr.msk.f32.mxu1 %vm11661_vm1, %v11660_v41 }
 0x37f   :  { %10671 = vmatprep.subr.mxu1 %v11660_v41  ;;  %v871_v30 = vrot.slane %v863_v17, %v11784_v28  ;;  %v887_v31 = vrot.slane %v879_v18, %v11784_v28 }
 0x381   :  { %v896_v6 = vcombine.high %v871_v30, %v887_v31 }
 0x385   :  { %10669 = vmatmul.mubr.f32.vlgmr.msra.gmra.mrb[2].mxu1 %v2017_v60  ;;  %v895_v60 = vcombine.low %v871_v30, %v887_v31 }
 0x386   :  { %10672 = vmatpush3.xpose.msra.mxu1 %v1951_v58  ;;  %10673 = vmatprep.mubr.msk.f32.mxu1 %vm11661_vm1, %v11660_v41 }
 0x387   :  { %10676 = vmatprep.subr.mxu1 %v11660_v41  ;;  %v3301_v40 = vsel %vm1491_vm2, %v895_v60, 0 }
 0x388   :  { %v12029_v46 = vand.u32 4294901760, %v3301_v40 }
 0x38a   :  { %v12040_v61 = vsub.f32 %v3301_v40, %v12029_v46  ;;  %v864_v40 = vcombine.high %v11991_v9, %v11994_v12 }
 0x38c   :  { %v878_v9 = vrot.slane %v864_v40, %v11784_v28 }
 0x38d   :  { %10674 = vmatmul.mubr.f32.vlgmr.msra.gmra.mrb[2].mxu1 %v2018_v34 }
 0x38e   :  { %10677 = vmatpush3.xpose.msra.mxu1 %v2029_v35  ;;  %10678 = vmatprep.mubr.msk.f32.mxu1 %vm11661_vm1, %v11660_v41 }
 0x38f   :  { %10681 = vmatprep.subr.mxu1 %v11660_v41 }
 0x395   :  { %10679 = vmatmul.mubr.f32.vlgmr.msra.gmra.mrb[2].mxu1 %v11913_v32 }
 0x396   :  { %10682 = vmatpush3.xpose.msra.mxu1 %v1951_v58  ;;  %10683 = vmatprep.mubr.msk.f32.mxu1 %vm11661_vm1, %v11660_v41 }
 0x397   :  { %10716 = vmatprep.subr.mxu1 %v11660_v41 }
 0x39d   :  { %10684 = vmatmul.mubr.f32.vlgmr.msra.gmra.mrb[2].mxu1 %v11913_v32  ;;  %v902_v32 = vpop.permute.xlu0 %901 }
 0x39e   :  { %10717 = vmatpush3.xpose.msra.mxu1 %v11969_v51  ;;  %10718 = vmatprep.mubr.msk.f32.mxu1 %vm11661_vm1, %v11660_v41 }
 0x39f   :  { %10721 = vmatprep.subr.mxu1 %v11660_v41 }
 0x3a1   :  { %10719 = vmatmul.mubr.f32.vlgmr.msra.gmra.mrb[4].mxu1 %v2924_v21  ;;  %v3374_v21 = vand.u32 4294901760, %v12040_v61 }
 0x3a2   :  { %10722 = vmatpush3.xpose.msra.mxu1 %v2935_v23  ;;  %10723 = vmatprep.mubr.msk.f32.mxu1 %vm11661_vm1, %v11660_v41  ;;  %v3753_v23 = vsel %vm1491_vm2, %v896_v6, 0 }
 0x3a3   :  { %v906_v29 = vpop.permute.xlu1 %905  ;;  %10726 = vmatprep.subr.mxu1 %v11660_v41  ;;  %v3375_v31 = vsub.f32 %v12040_v61, %v3374_v21 }
 0x3a7   :  { %v914_v58 = vpop.permute.xlu1 %913 }
 0x3a8   :  { %v1007_v33 = vcombine.low %v906_v29, %v914_v58  ;;  %v1008_v34 = vcombine.high %v906_v29, %v914_v58  ;;  %v910_v35 = vpop.permute.xlu0 %909 }
 0x3a9   :  { %v991_v36 = vcombine.low %v902_v32, %v910_v35  ;;  %v992_v37 = vcombine.high %v902_v32, %v910_v35  ;;  %10724 = vmatmul.mubr.f32.vlgmr.msra.gmra.mrb[4].mxu1 %v11966_v52 }
 0x3aa   :  { %v1015_v38 = vrot.slane %v1007_v33, %v11769_v22  ;;  %v1022_v39 = vrot.slane %v1008_v34, %v11769_v22  ;;  %10727 = vmatpush3.xpose.msra.mxu1 %v11979_v0  ;;  %10728 = vmatprep.mubr.msk.f32.mxu1 %vm11661_vm1, %v11660_v41 }
 0x3ab   :  { %v999_v26 = vrot.slane %v991_v36, %v11769_v22  ;;  %v1006_v27 = vrot.slane %v992_v37, %v11769_v22  ;;  %10731 = vmatprep.subr.mxu1 %v11660_v41 }
 0x3ad   :  { %v1023_v42 = vcombine.low %v999_v26, %v1015_v38  ;;  %v1024_v43 = vcombine.high %v999_v26, %v1015_v38  ;;  %v1039_v44 = vcombine.low %v1006_v27, %v1022_v39  ;;  %v1040_v45 = vcombine.high %v1006_v27, %v1022_v39 }
 0x3af   :  { %v1031_v47 = vrot.slane %v1023_v42, %v11784_v28  ;;  %v1038_v48 = vrot.slane %v1024_v43, %v11784_v28  ;;  %v1047_v53 = vrot.slane %v1039_v44, %v11784_v28  ;;  %v1054_v54 = vrot.slane %v1040_v45, %v11784_v28 }
 0x3b0   :  { %v880_v42 = vcombine.high %v11997_v13, %v12000_v14 }
 0x3b1   :  { %v1127_v49 = vcombine.low %v1031_v47, %v1038_v48  ;;  %v10246_v50 = vcombine.high %v1031_v47, %v1038_v48  ;;  %v1143_v55 = vcombine.low %v1047_v53, %v1054_v54  ;;  %v10247_v56 = vcombine.high %v1047_v53, %v1054_v54  ;;  %10729 = vmatmul.mubr.f32.vlgmr.msra.gmra.mrb[4].mxu1 %v11972_v57 }
 0x3b2   :  { %10732 = vmatpush3.xpose.msra.mxu1 %v11969_v51  ;;  %10733 = vmatprep.mubr.msk.f32.mxu1 %vm11661_vm1, %v11660_v41  ;;  %v12075_v57 = vand.u32 4294901760, %v3753_v23  ;;  %v894_v12 = vrot.slane %v880_v42, %v11784_v28 }
 0x3b3   :  { %v12043_v62 = vrot.slane %v1127_v49, %v11769_v22  ;;  %v12046_v2 = vrot.slane %v10246_v50, %v11769_v22  ;;  %v12049_v3 = vrot.slane %v1143_v55, %v11769_v22  ;;  %v12052_v5 = vrot.slane %v10247_v56, %v11769_v22  ;;  %10736 = vmatprep.subr.mxu1 %v11660_v41 }
 0x3b4   :  { %v12085_v33 = vsub.f32 %v3753_v23, %v12075_v57  ;;  %v897_v45 = vcombine.low %v878_v9, %v894_v12  ;;  %v898_v56 = vcombine.high %v878_v9, %v894_v12 }
 0x3b5   :  { %v1159_v8 = vcombine.low %v12043_v62, %v12046_v2  ;;  %v1175_v15 = vcombine.low %v12049_v3, %v12052_v5  ;;  %v1176_v44 = vcombine.high %v12049_v3, %v12052_v5 }
 0x3b6   :  { %v3826_v37 = vand.u32 4294901760, %v12085_v33  ;;  %v4205_v48 = vsel %vm1491_vm2, %v897_v45, 0  ;;  %v4657_v3 = vsel %vm1491_vm2, %v898_v56, 0 }
 0x3b7   :  { %v1167_v17 = vrot.slane %v1159_v8, %v11784_v28  ;;  %v1183_v18 = vrot.slane %v1175_v15, %v11784_v28  ;;  %v1190_v14 = vrot.slane %v1176_v44, %v11784_v28  ;;  %v12143_v54 = vand.u32 4294901760, %v4205_v48 }
 0x3b8   :  { %v3827_v26 = vsub.f32 %v12085_v33, %v3826_v37  ;;  %v12164_v8 = vand.u32 4294901760, %v4657_v3 }
 0x3b9   :  { %10734 = vmatmul.mubr.f32.vlgmr.msra.gmra.mrb[4].mxu1 %v2922_v1  ;;  %v1191_v29 = vcombine.low %v1167_v17, %v1183_v18  ;;  %v1192_v32 = vcombine.high %v1167_v17, %v1183_v18  ;;  %v4277_v50 = vsub.f32 %v4205_v48, %v12143_v54 }
 0x3ba   :  { %10737 = vmatpush3.xpose.msra.mxu1 %v2933_v7  ;;  %10738 = vmatprep.mubr.msk.f32.mxu1 %vm11661_vm1, %v11660_v41  ;;  %v3376_v7 = vand.u32 4294901760, %v3375_v31  ;;  %v3828_v27 = vand.u32 4294901760, %v3827_v26 }
 0x3bb   :  { %v3304_v30 = vsel %vm1491_vm2, %v1191_v29, 0  ;;  %10741 = vmatprep.subr.mxu1 %v11660_v41  ;;  %v3756_v58 = vsel %vm1491_vm2, %v1192_v32, 0 }
 0x3bc   :  { %v12077_v1 = vand.u32 4294901760, %v3304_v30  ;;  %v12079_v60 = vand.u32 4294901760, %v3756_v58 }
 0x3be   :  { %10747 = vmatpush3.xpose.msra.mxu0 %v12077_v1  ;;  %v3384_v0 = vsub.f32 %v3304_v30, %v12077_v1  ;;  %v12088_v35 = vsub.f32 %v3756_v58, %v12079_v60 }
 0x3bf   :  { %10751 = vmatprep.subr.mxu0 %v11660_v41 }
 0x3c0   :  { %v3385_v34 = vand.u32 4294901760, %v3384_v0  ;;  %v3837_v39 = vand.u32 4294901760, %v12088_v35 }
 0x3c1   :  { %10749 = vmatmul.mubr.f32.vlgmr.msra.gmra.mrb[4].mxu0 %v3376_v7  ;;  %10739 = vmatmul.mubr.f32.vlgmr.msra.gmra.mrb[4].mxu1 %v11966_v52 }
 0x3c2   :  { %10742 = vmatpush3.xpose.msra.mxu1 %v11969_v51  ;;  %v3386_v36 = vsub.f32 %v3384_v0, %v3385_v34  ;;  %10753 = vmatprep.mubr.msk.f32.mxu0 %vm11661_vm1, %v11660_v41  ;;  %v3838_v51 = vsub.f32 %v12088_v35, %v3837_v39 }
 0x3c3   :  { %10743 = vmatprep.mubr.msk.f32.mxu1 %vm11661_vm1, %v11660_v41  ;;  %10776 = vmatprep.subr.mxu1 %v11660_v41 }
 0x3c4   :  { %v3387_v38 = vand.u32 4294901760, %v3386_v36  ;;  %v3839_v43 = vand.u32 4294901760, %v3838_v51 }
 0x3c6   :  { %10752 = vmatpush3.xpose.msra.mxu0 %v3387_v38 }
 0x3c7   :  { %10756 = vmatprep.subr.mxu0 %v11660_v41 }
 0x3c9   :  { %10754 = vmatmul.mubr.f32.vlgmr.msra.gmra.mrb[4].mxu0 %v12029_v46  ;;  %10744 = vmatmul.mubr.f32.vlgmr.msra.gmra.mrb[4].mxu1 %v11966_v52  ;;  %v1160_v52 = vcombine.high %v12043_v62, %v12046_v2  ;;  %v4278_v62 = vand.u32 4294901760, %v4277_v50 }
 0x3ca   :  { %10757 = vmatpush3.xpose.msra.mxu0 %v3384_v0  ;;  %10777 = vmatpush3.xpose.msra.mxu1 %v12079_v60 }
 0x3cb   :  { %10778 = vmatprep.mubr.msk.f32.mxu1 %vm11661_vm1, %v11660_v41  ;;  %10781 = vmatprep.subr.mxu1 %v11660_v41  ;;  %v1174_v13 = vrot.slane %v1160_v52, %v11784_v28  ;;  %v4279_v6 = vsub.f32 %v4277_v50, %v4278_v62 }
 0x3cc   :  { %10758 = vmatprep.mubr.msk.f32.mxu0 %vm11661_vm1, %v11660_v41  ;;  %10761 = vmatprep.subr.mxu0 %v11660_v41 }
 0x3cd   :  { %10779 = vmatmul.mubr.f32.vlgmr.msra.gmra.mrb[6].mxu1 %v3828_v27  ;;  %v1193_v47 = vcombine.low %v1174_v13, %v1190_v14  ;;  %v4280_v18 = vand.u32 4294901760, %v4279_v6 }
 0x3ce   :  { %10782 = vmatpush3.xpose.msra.mxu1 %v3839_v43  ;;  %10783 = vmatprep.mubr.msk.f32.mxu1 %vm11661_vm1, %v11660_v41 }
 0x3cf   :  { %10786 = vmatprep.subr.mxu1 %v11660_v41  ;;  %v4208_v53 = vsel %vm1491_vm2, %v1193_v47, 0 }
 0x3d0   :  { %v12145_v49 = vand.u32 4294901760, %v4208_v53 }
 0x3d1   :  { %10759 = vmatmul.mubr.f32.vlgmr.msra.gmra.mrb[4].mxu0 %v12040_v61  ;;  %v1194_v61 = vcombine.high %v1174_v13, %v1190_v14 }
 0x3d2   :  { %10762 = vmatpush3.xpose.msra.mxu0 %v12077_v1  ;;  %10763 = vmatprep.mubr.msk.f32.mxu0 %vm11661_vm1, %v11660_v41  ;;  %v4288_v55 = vsub.f32 %v4208_v53, %v12145_v49 }
 0x3d3   :  { %10766 = vmatprep.subr.mxu0 %v11660_v41  ;;  %v4660_v5 = vsel %vm1491_vm2, %v1194_v61, 0 }
 0x3d4   :  { %v4289_v2 = vand.u32 4294901760, %v4288_v55  ;;  %v4663_v17 = vand.u32 4294901760, %v4660_v5 }
 0x3d5   :  { %10784 = vmatmul.mubr.f32.vlgmr.msra.gmra.mrb[6].mxu1 %v12075_v57 }
 0x3d6   :  { %10787 = vmatpush3.xpose.msra.mxu1 %v12088_v35  ;;  %10788 = vmatprep.mubr.msk.f32.mxu1 %vm11661_vm1, %v11660_v41  ;;  %v4290_v15 = vsub.f32 %v4288_v55, %v4289_v2  ;;  %v4740_v29 = vsub.f32 %v4660_v5, %v4663_v17 }
 0x3d7   :  { %10791 = vmatprep.subr.mxu1 %v11660_v41 }
 0x3d8   :  { %v4291_v23 = vand.u32 4294901760, %v4290_v15  ;;  %v4741_v32 = vand.u32 4294901760, %v4740_v29 }
 0x3d9   :  { %10764 = vmatmul.mubr.f32.vlgmr.msra.gmra.mrb[4].mxu0 %v3374_v21  ;;  %v4729_v21 = vsub.f32 %v4657_v3, %v12164_v8 }
 0x3da   :  { %10767 = vmatpush3.xpose.msra.mxu0 %v3385_v34  ;;  %10768 = vmatprep.mubr.msk.f32.mxu0 %vm11661_vm1, %v11660_v41  ;;  %v4742_v31 = vsub.f32 %v4740_v29, %v4741_v32 }
 0x3db   :  { %10771 = vmatprep.subr.mxu0 %v11660_v41 }
 0x3dd   :  { %10789 = vmatmul.mubr.f32.vlgmr.msra.gmra.mrb[6].mxu1 %v12085_v33 }
 0x3de   :  { %10792 = vmatpush3.xpose.msra.mxu1 %v12079_v60  ;;  %10793 = vmatprep.mubr.msk.f32.mxu1 %vm11661_vm1, %v11660_v41 }
 0x3df   :  { %10796 = vmatprep.subr.mxu1 %v11660_v41 }
 0x3e1   :  { %10769 = vmatmul.mubr.f32.vlgmr.msra.gmra.mrb[4].mxu0 %v12029_v46 }
 0x3e2   :  { %10772 = vmatpush3.xpose.msra.mxu0 %v12077_v1  ;;  %10773 = vmatprep.mubr.msk.f32.mxu0 %vm11661_vm1, %v11660_v41  ;;  %v4743_v1 = vand.u32 4294901760, %v4742_v31 }
 0x3e3   :  { %10806 = vmatprep.subr.mxu0 %v11660_v41 }
 0x3e5   :  { %10794 = vmatmul.mubr.f32.vlgmr.msra.gmra.mrb[6].mxu1 %v3826_v37 }
 0x3e6   :  { %10797 = vmatpush3.xpose.msra.mxu1 %v3837_v39  ;;  %10798 = vmatprep.mubr.msk.f32.mxu1 %vm11661_vm1, %v11660_v41 }
 0x3e7   :  { %10801 = vmatprep.subr.mxu1 %v11660_v41 }
 0x3e9   :  { %10774 = vmatmul.mubr.f32.vlgmr.msra.gmra.mrb[4].mxu0 %v12029_v46  ;;  %v4730_v46 = vand.u32 4294901760, %v4729_v21 }
 0x3ea   :  { %10807 = vmatpush3.xpose.msra.mxu0 %v12145_v49  ;;  %10808 = vmatprep.mubr.msk.f32.mxu0 %vm11661_vm1, %v11660_v41 }
 0x3eb   :  { %10811 = vmatprep.subr.mxu0 %v11660_v41  ;;  %v4731_v30 = vsub.f32 %v4729_v21, %v4730_v46 }
 0x3ed   :  { %10809 = vmatmul.mubr.f32.vlgmr.msra.gmra.mrb[6].mxu0 %v4280_v18  ;;  %10799 = vmatmul.mubr.f32.vlgmr.msra.gmra.mrb[6].mxu1 %v12075_v57  ;;  %v4732_v58 = vand.u32 4294901760, %v4731_v30 }
 0x3ee   :  { %10812 = vmatpush3.xpose.msra.mxu0 %v4291_v23  ;;  %10802 = vmatpush3.xpose.msra.mxu1 %v12079_v60 }
 0x3ef   :  { %10813 = vmatprep.mubr.msk.f32.mxu0 %vm11661_vm1, %v11660_v41  ;;  %10816 = vmatprep.subr.mxu0 %v11660_v41 }
 0x3f0   :  { %10803 = vmatprep.mubr.msk.f32.mxu1 %vm11661_vm1, %v11660_v41  ;;  %10836 = vmatprep.subr.mxu1 %v11660_v41 }
 0x3f5   :  { %10814 = vmatmul.mubr.f32.vlgmr.msra.gmra.mrb[6].mxu0 %v12143_v54  ;;  %10804 = vmatmul.mubr.f32.vlgmr.msra.gmra.mrb[6].mxu1 %v12075_v57 }
 0x3f6   :  { %10817 = vmatpush3.xpose.msra.mxu0 %v4288_v55  ;;  %10837 = vmatpush3.xpose.msra.mxu1 %v4663_v17 }
 0x3f7   :  { %10838 = vmatprep.mubr.msk.f32.mxu1 %vm11661_vm1, %v11660_v41  ;;  %10841 = vmatprep.subr.mxu1 %v11660_v41 }
 0x3f8   :  { %10818 = vmatprep.mubr.msk.f32.mxu0 %vm11661_vm1, %v11660_v41  ;;  %10821 = vmatprep.subr.mxu0 %v11660_v41 }
 0x3f9   :  { %10839 = vmatmul.mubr.f32.vlgmr.msra.gmra.mrb[8].mxu1 %v4732_v58 }
 0x3fa   :  { %10842 = vmatpush3.xpose.msra.mxu1 %v4743_v1  ;;  %10843 = vmatprep.mubr.msk.f32.mxu1 %vm11661_vm1, %v11660_v41 }
 0x3fb   :  { %10846 = vmatprep.subr.mxu1 %v11660_v41 }
 0x3fd   :  { %10819 = vmatmul.mubr.f32.vlgmr.msra.gmra.mrb[6].mxu0 %v4277_v50 }
 0x3fe   :  { %10822 = vmatpush3.xpose.msra.mxu0 %v12145_v49  ;;  %10823 = vmatprep.mubr.msk.f32.mxu0 %vm11661_vm1, %v11660_v41 }
 0x3ff   :  { %10826 = vmatprep.subr.mxu0 %v11660_v41 }
 0x401   :  { %10844 = vmatmul.mubr.f32.vlgmr.msra.gmra.mrb[8].mxu1 %v12164_v8 }
 0x402   :  { %10847 = vmatpush3.xpose.msra.mxu1 %v4740_v29  ;;  %10848 = vmatprep.mubr.msk.f32.mxu1 %vm11661_vm1, %v11660_v41 }
 0x403   :  { %10851 = vmatprep.subr.mxu1 %v11660_v41 }
 0x405   :  { %10824 = vmatmul.mubr.f32.vlgmr.msra.gmra.mrb[6].mxu0 %v4278_v62 }
 0x406   :  { %10827 = vmatpush3.xpose.msra.mxu0 %v4289_v2  ;;  %10828 = vmatprep.mubr.msk.f32.mxu0 %vm11661_vm1, %v11660_v41 }
 0x407   :  { %10831 = vmatprep.subr.mxu0 %v11660_v41 }
 0x409   :  { %10849 = vmatmul.mubr.f32.vlgmr.msra.gmra.mrb[8].mxu1 %v4729_v21 }
 0x40a   :  { %10852 = vmatpush3.xpose.msra.mxu1 %v4663_v17  ;;  %10853 = vmatprep.mubr.msk.f32.mxu1 %vm11661_vm1, %v11660_v41 }
 0x40b   :  { %10856 = vmatprep.subr.mxu1 %v11660_v41 }
 0x40d   :  { %10829 = vmatmul.mubr.f32.vlgmr.msra.gmra.mrb[6].mxu0 %v12143_v54 }
 0x40e   :  { %10832 = vmatpush3.xpose.msra.mxu0 %v12145_v49  ;;  %10833 = vmatprep.mubr.msk.f32.mxu0 %vm11661_vm1, %v11660_v41 }
 0x40f   :  { %10866 = vmatprep.subr.mxu0 %v11660_v41 }
 0x411   :  { %10854 = vmatmul.mubr.f32.vlgmr.msra.gmra.mrb[8].mxu1 %v4730_v46 }
 0x412   :  { %10857 = vmatpush3.xpose.msra.mxu1 %v4741_v32  ;;  %10858 = vmatprep.mubr.msk.f32.mxu1 %vm11661_vm1, %v11660_v41 }
 0x413   :  { %10861 = vmatprep.subr.mxu1 %v11660_v41 }
 0x415   :  { %10834 = vmatmul.mubr.f32.vlgmr.msra.gmra.mrb[6].mxu0 %v12143_v54 }
 0x416   :  { %10868 = vmatprep.mubr.msk.f32.mxu0 %vm11661_vm1, %v11660_v41 }
 0x419   :  { %10859 = vmatmul.mubr.f32.vlgmr.msra.gmra.mrb[8].mxu1 %v12164_v8 }
 0x41a   :  { %10862 = vmatpush3.xpose.msra.mxu1 %v4663_v17  ;;  %10863 = vmatprep.mubr.msk.f32.mxu1 %vm11661_vm1, %v11660_v41 }
 0x41b   :  { %10896 = vmatprep.subr.mxu1 %v11660_v41 }
 0x421   :  { %10864 = vmatmul.mubr.f32.vlgmr.msra.gmra.mrb[8].mxu1 %v12164_v8 }
 0x422   :  { %10898 = vmatprep.mubr.msk.f32.mxu1 %vm11661_vm1, %v11660_v41 }
 0x444   :  { %v1940_v57 = vpop.f32.mrb[0].mxu1  ;;  %v2844_v60 = vpop.f32.mrb[2].mxu0 }
 0x445   :  { %v10655_v0 = vpop.f32.mrb[1].mxu1  ;;  %v10715_v7 = vpop.f32.mrb[3].mxu0  ;;  %v5108_v33 = vsel %vm1491_vm2, %v1940_v57, -inf  ;;  %v5114_v34 = vsel %vm1491_vm2, %v2844_v60, -inf }
 0x446   :  { %5109 = vmax.xlane.f32.xlu0 %v5108_v33 }
 0x44a   :  { %5115 = vmax.xlane.f32.xlu0 %v5114_v34 }
 0x470   :  { %v2392_v35 = vpop.f32.mrb[2].mxu1 }
 0x471   :  { %v10685_v36 = vpop.f32.mrb[3].mxu1  ;;  %v5111_v37 = vsel %vm1491_vm2, %v2392_v35, -inf }
 0x472   :  { %5112 = vmax.xlane.f32.xlu1 %v5111_v37 }
 0x49c   :  { %v3296_v38 = vpop.f32.mrb[4].mxu1 }
 0x49d   :  { %v10745_v39 = vpop.f32.mrb[5].mxu1  ;;  %v5117_v26 = vsel %vm1491_vm2, %v3296_v38, -inf }
 0x49e   :  { %5118 = vmax.xlane.f32.xlu0 %v5117_v26 }
 0x4bc   :  { %v3748_v51 = vpop.f32.mrb[4].mxu0 }
 0x4bd   :  { %v10775_v27 = vpop.f32.mrb[5].mxu0  ;;  %v5120_v40 = vsel %vm1491_vm2, %v3748_v51, -inf }
 0x4be   :  { %5121 = vmax.xlane.f32.xlu0 %v5120_v40 }
 0x4c8   :  { %v4200_v42 = vpop.f32.mrb[6].mxu1 }
 0x4c9   :  { %v10805_v43 = vpop.f32.mrb[7].mxu1  ;;  %v5123_v52 = vsel %vm1491_vm2, %v4200_v42, -inf }
 0x4ca   :  { %5124 = vmax.xlane.f32.xlu1 %v5123_v52 }
 0x4d3   :  { %v5110_v44 = vpop.xlane.xlu0 %5109 }
 0x4d4   :  { %v5132_v9 = vsub.f32 %v1940_v57, %v5110_v44 }
 0x4d6   :  { %v5140_v12 = vmul.f32 1.442695, %v5132_v9 }
 0x4d8   :  { %11594 = vpow2.f32 %v5140_v12 }
 0x4db   :  { %1199 = vrot.lane.b32.xlu1 %v11763_v20, %s11662_s11  ;;  %v5116_v20 = vpop.xlane.xlu0 %5115 }
 0x4dc   :  { %v5134_v55 = vsub.f32 %v2844_v60, %v5116_v20 }
 0x4df   :  { %1203 = vrot.lane.b32.xlu1 %v11761_v19, %s11662_s11  ;;  %v5144_v19 = vmul.f32 1.442695, %v5134_v55 }
 0x4e2   :  { %v11595_v13 = vpop.eup %11594 }
 0x4e3   :  { %v5156_v14 = vsel %vm1491_vm2, %v11595_v13, 0.0 }
 0x4e4   :  { %5157 = vadd.xlane.f32.xlu0 %v5156_v14 }
 0x4e8   :  { %v12234_v45 = vpop.f32.mrb[6].mxu0 }
 0x4e9   :  { %v10835_v47 = vpop.f32.mrb[7].mxu0  ;;  %v5126_v62 = vsel %vm1491_vm2, %v12234_v45, -inf }
 0x4f4   :  { %v12236_v48 = vpop.f32.mrb[8].mxu1 }
 0x4f5   :  { %v10865_v53 = vpop.f32.mrb[9].mxu1  ;;  %v5129_v17 = vsel %vm1491_vm2, %v12236_v48, -inf }
 0x4fa   :  { %1195 = vrot.lane.b32.xlu0 %v11752_v11, %s11662_s11 }
 0x4ff   :  { %v5113_v54 = vpop.xlane.xlu1 %5112 }
 0x500   :  { %v5133_v49 = vsub.f32 %v2392_v35, %v5113_v54 }
 0x502   :  { %v5142_v50 = vmul.f32 1.442695, %v5133_v49 }
 0x504   :  { %11596 = vpow2.f32 %v5142_v50 }
 0x505   :  { %11598 = vpow2.f32 %v5144_v19 }
 0x50e   :  { %v12240_v56 = vpop.eup %11596 }
 0x50f   :  { %v5159_v61 = vsel %vm1491_vm2, %v12240_v56, 0.0  ;;  %v12246_v2 = vpop.eup %11598 }
 0x510   :  { %5160 = vadd.xlane.f32.xlu1 %v5159_v61  ;;  %v5162_v11 = vsel %vm1491_vm2, %v12246_v2, 0.0 }
 0x519   :  { %5127 = vmax.xlane.f32.xlu0 %v5126_v62 }
 0x51d   :  { %5163 = vadd.xlane.f32.xlu0 %v5162_v11 }
 0x521   :  { %1207 = vrot.lane.b32.xlu1 %v11775_v25, %s11662_s11 }
 0x52b   :  { %v5119_v3 = vpop.xlane.xlu0 %5118 }
 0x52c   :  { %v5135_v5 = vsub.f32 %v3296_v38, %v5119_v3 }
 0x52e   :  { %v5146_v6 = vmul.f32 1.442695, %v5135_v5 }
 0x530   :  { %11600 = vpow2.f32 %v5146_v6 }
 0x53a   :  { %v12252_v8 = vpop.eup %11600 }
 0x53b   :  { %v5165_v15 = vsel %vm1491_vm2, %v12252_v8, 0.0 }
 0x53c   :  { %5166 = vadd.xlane.f32.xlu0 %v5165_v15 }
 0x545   :  { %5130 = vmax.xlane.f32.xlu1 %v5129_v17 }
 0x54b   :  { %v5122_v18 = vpop.xlane.xlu0 %5121 }
 0x54c   :  { %v5136_v21 = vsub.f32 %v3748_v51, %v5122_v18 }
 0x54e   :  { %v5148_v23 = vmul.f32 1.442695, %v5136_v21 }
 0x550   :  { %11602 = vpow2.f32 %v5148_v23 }
 0x556   :  { %1201 = vrot.lane.b32.xlu1 %v11828_v4, %s11662_s11 }
 0x557   :  { %v5125_v46 = vpop.xlane.xlu1 %5124 }
 0x558   :  { %v5137_v32 = vsub.f32 %v4200_v42, %v5125_v46 }
 0x55a   :  { %v12260_v25 = vpop.eup %11602  ;;  %1205 = vrot.lane.b32.xlu1 %v11840_v24, %s11662_s11  ;;  %v5150_v30 = vmul.f32 1.442695, %v5137_v32 }
 0x55b   :  { %v5168_v29 = vsel %vm1491_vm2, %v12260_v25, 0.0  ;;  %v1200_v24 = vpop.permute.xlu1 %1199 }
 0x55c   :  { %5169 = vadd.xlane.f32.xlu0 %v5168_v29  ;;  %11604 = vpow2.f32 %v5150_v30 }
 0x55f   :  { %v1204_v1 = vpop.permute.xlu1 %1203 }
 0x566   :  { %v12268_v31 = vpop.eup %11604 }
 0x567   :  { %v5171_v4 = vsel %vm1491_vm2, %v12268_v31, 0.0 }
 0x571   :  { %v5158_v58 = vpop.xlane.xlu0 %5157 }
 0x572   :  { %1197 = vrot.lane.b32.xlu0 %v11750_v10, %s11662_s11  ;;  %11606 = vrcp.f32 %v5158_v58 }
 0x575   :  { %v1196_v60 = vpop.permute.xlu0 %1195 }
 0x576   :  { %v1219_v33 = vcombine.low %v1196_v60, %v1204_v1  ;;  %v1220_v10 = vcombine.high %v1196_v60, %v1204_v1 }
 0x578   :  { %v1227_v38 = vrot.slane %v1219_v33, %v11769_v22  ;;  %v1234_v39 = vrot.slane %v1220_v10, %v11769_v22 }
 0x57c   :  { %v11607_v57 = vpop.eup %11606 }
 0x57d   :  { %v5181_v7 = vmul.f32 %v11607_v57, %v11595_v13 }
 0x57e   :  { %5172 = vadd.xlane.f32.xlu1 %v5171_v4 }
 0x57f   :  { %v5197_v37 = vsel %vm1491_vm2, %v5181_v7, 0 }
 0x580   :  { %v12279_v51 = vand.u32 4294901760, %v5197_v37 }
 0x582   :  { %v12288_v49 = vsub.f32 %v5197_v37, %v12279_v51 }
 0x584   :  { %v5267_v3 = vand.u32 4294901760, %v12288_v49 }
 0x586   :  { %v5268_v23 = vsub.f32 %v12288_v49, %v5267_v3 }
 0x588   :  { %v5269_v1 = vand.u32 4294901760, %v5268_v23 }
 0x58f   :  { %1209 = vrot.lane.b32.xlu1 %v11838_v16, %s11662_s11  ;;  %s10227_s11 = sshll.u32 %s11666_s10, 4  ;;  %s10228_s11 = int_to_ptr.vmem [resolvable:$true] %s10227_s11 }
 0x590   :  { %p11635_p1 = scmp.lt.s32.totalorder %s10228_s11, %s10228_s11 }
 0x59d   :  { %v5161_v0 = vpop.xlane.xlu1 %5160 }
 0x59e   :  { %11608 = vrcp.f32 %v5161_v0 }
 0x5a1   :  { %v1208_v34 = vpop.permute.xlu1 %1207 }
 0x5a2   :  { %v1235_v35 = vcombine.low %v1200_v24, %v1208_v34  ;;  %v1236_v36 = vcombine.high %v1200_v24, %v1208_v34 }
 0x5a4   :  { %v1243_v16 = vrot.slane %v1235_v35, %v11769_v22  ;;  %v1250_v26 = vrot.slane %v1236_v36, %v11769_v22 }
 0x5a6   :  { %v1251_v27 = vcombine.low %v1227_v38, %v1243_v16  ;;  %v1252_v40 = vcombine.high %v1227_v38, %v1243_v16  ;;  %v1267_v42 = vcombine.low %v1234_v39, %v1250_v26  ;;  %v1268_v43 = vcombine.high %v1234_v39, %v1250_v26  ;;  %v5128_v52 = vpop.xlane.xlu0 %5127 }
 0x5a7   :  { %v5138_v44 = vsub.f32 %v12234_v45, %v5128_v52 }
 0x5a8   :  { %v11609_v9 = vpop.eup %11608  ;;  %v1259_v12 = vrot.slane %v1251_v27, %v11784_v28  ;;  %v1266_v13 = vrot.slane %v1252_v40, %v11784_v28  ;;  %v1275_v14 = vrot.slane %v1267_v42, %v11784_v28  ;;  %v1282_v47 = vrot.slane %v1268_v43, %v11784_v28 }
 0x5a9   :  { %v5183_v53 = vmul.f32 %v11609_v9, %v12240_v56  ;;  %v5152_v54 = vmul.f32 1.442695, %v5138_v44 }
 0x5aa   :  { %v1355_v50 = vcombine.low %v1259_v12, %v1266_v13  ;;  %v10248_v20 = vcombine.high %v1259_v12, %v1266_v13  ;;  %v1371_v55 = vcombine.low %v1275_v14, %v1282_v47  ;;  %v10249_v19 = vcombine.high %v1275_v14, %v1282_v47  ;;  %v5164_v36 = vpop.xlane.xlu0 %5163 }
 0x5ab   :  { %11610 = vpow2.f32 %v5152_v54  ;;  %v5646_v45 = vsel %vm1491_vm2, %v5183_v53, 0 }
 0x5ac   :  { %v12292_v61 = vrot.slane %v1355_v50, %v11769_v22  ;;  %v12295_v62 = vrot.slane %v10248_v20, %v11769_v22  ;;  %v12298_v11 = vrot.slane %v1371_v55, %v11769_v22  ;;  %v12301_v56 = vrot.slane %v10249_v19, %v11769_v22 }
 0x5ad   :  { %v12304_v5 = vand.u32 4294901760, %v5646_v45  ;;  %11612 = vrcp.f32 %v5164_v36 }
 0x5ae   :  { %v1387_v6 = vcombine.low %v12292_v61, %v12295_v62  ;;  %v1403_v15 = vcombine.low %v12298_v11, %v12301_v56  ;;  %v1388_v39 = vcombine.high %v12292_v61, %v12295_v62  ;;  %v1404_v16 = vcombine.high %v12298_v11, %v12301_v56 }
 0x5af   :  { %v12311_v17 = vsub.f32 %v5646_v45, %v12304_v5 }
 0x5b0   :  { %v1395_v18 = vrot.slane %v1387_v6, %v11784_v28  ;;  %v1411_v21 = vrot.slane %v1403_v15, %v11784_v28  ;;  %v1402_v42 = vrot.slane %v1388_v39, %v11784_v28  ;;  %v1418_v43 = vrot.slane %v1404_v16, %v11784_v28 }
 0x5b1   :  { %v5716_v29 = vand.u32 4294901760, %v12311_v17 }
 0x5b2   :  { %v1419_v46 = vcombine.low %v1395_v18, %v1411_v21  ;;  %v1420_v32 = vcombine.high %v1395_v18, %v1411_v21  ;;  %v1421_v52 = vcombine.low %v1402_v42, %v1418_v43  ;;  %v1422_v44 = vcombine.high %v1402_v42, %v1418_v43 }
 0x5b3   :  { %v5717_v30 = vsub.f32 %v12311_v17, %v5716_v29 }
 0x5b4   :  { %v12320_v4 = vand.u32 4294901760, %v1419_v46  ;;  %v12322_v58 = vand.u32 4294901760, %v1420_v32  ;;  %v12377_v14 = vand.u32 4294901760, %v1421_v52  ;;  %v12379_v47 = vand.u32 4294901760, %v1422_v44 }
 0x5b5   :  { %v12324_v24 = vpop.eup %11610  ;;  %v5718_v57 = vand.u32 4294901760, %v5717_v30 }
 0x5b6   :  { %10867 = vmatpush3.msra.mxu0 %v12320_v4  ;;  %v5277_v60 = vsub.f32 %v1419_v46, %v12320_v4  ;;  %10897 = vmatpush3.msra.mxu1 %v12322_v58  ;;  %v5726_v0 = vsub.f32 %v1420_v32, %v12322_v58  ;;  %v5174_v7 = vsel %vm1491_vm2, %v12324_v24, 0.0  ;;  %v6175_v20 = vsub.f32 %v1421_v52, %v12377_v14 }
 0x5b7   :  { %10869 = vmatmul.mubr.f32.vlgmr.msra.gmra.mrb[8].mxu0 %v5269_v1  ;;  %10899 = vmatmul.mubr.f32.vlgmr.msra.gmra.mrb[10].mxu1 %v5718_v57  ;;  %v11613_v26 = vpop.eup %11612 }
 0x5b8   :  { %5175 = vadd.xlane.f32.xlu0 %v5174_v7  ;;  %10871 = vmatprep.subr.mxu0 %v11660_v41  ;;  %v5278_v33 = vand.u32 4294901760, %v5277_v60  ;;  %v5727_v10 = vand.u32 4294901760, %v5726_v0  ;;  %v5185_v40 = vmul.f32 %v11613_v26, %v12246_v2  ;;  %v6176_v61 = vand.u32 4294901760, %v6175_v20 }
 0x5b9   :  { %10901 = vmatprep.subr.mxu1 %v11660_v41  ;;  %10873 = vmatprep.mubr.msk.f32.mxu0 %vm11661_vm1, %v11660_v41 }
 0x5ba   :  { %v5279_v34 = vsub.f32 %v5277_v60, %v5278_v33  ;;  %v5728_v35 = vsub.f32 %v5726_v0, %v5727_v10  ;;  %10903 = vmatprep.mubr.msk.f32.mxu1 %vm11661_vm1, %v11660_v41  ;;  %v6095_v9 = vsel %vm1491_vm2, %v5185_v40, 0  ;;  %v6177_v6 = vsub.f32 %v6175_v20, %v6176_v61 }
 0x5bb   :  { %v12373_v12 = vand.u32 4294901760, %v6095_v9 }
 0x5bc   :  { %v5280_v37 = vand.u32 4294901760, %v5279_v34  ;;  %v5729_v38 = vand.u32 4294901760, %v5728_v35 }
 0x5bd   :  { %v12383_v50 = vsub.f32 %v6095_v9, %v12373_v12 }
 0x5be   :  { %10872 = vmatpush3.msra.mxu0 %v5280_v37  ;;  %10902 = vmatpush3.msra.mxu1 %v5729_v38 }
 0x5bf   :  { %10874 = vmatmul.mubr.f32.vlgmr.msra.gmra.mrb[8].mxu0 %v12279_v51  ;;  %10876 = vmatprep.subr.mxu0 %v11660_v41 }
 0x5c0   :  { %10904 = vmatmul.mubr.f32.vlgmr.msra.gmra.mrb[10].mxu1 %v12304_v5  ;;  %10906 = vmatprep.subr.mxu1 %v11660_v41 }
 0x5c1   :  { %10877 = vmatpush3.msra.mxu0 %v5277_v60  ;;  %10907 = vmatpush3.msra.mxu1 %v5726_v0 }
 0x5c2   :  { %10878 = vmatprep.mubr.msk.f32.mxu0 %vm11661_vm1, %v11660_v41  ;;  %10881 = vmatprep.subr.mxu0 %v11660_v41 }
 0x5c3   :  { %10908 = vmatprep.mubr.msk.f32.mxu1 %vm11661_vm1, %v11660_v41  ;;  %10911 = vmatprep.subr.mxu1 %v11660_v41 }
 0x5c7   :  { %10879 = vmatmul.mubr.f32.vlgmr.msra.gmra.mrb[8].mxu0 %v12288_v49 }
 0x5c8   :  { %10882 = vmatpush3.msra.mxu0 %v12320_v4  ;;  %10909 = vmatmul.mubr.f32.vlgmr.msra.gmra.mrb[10].mxu1 %v12311_v17 }
 0x5c9   :  { %10912 = vmatpush3.msra.mxu1 %v12322_v58  ;;  %v5167_v27 = vpop.xlane.xlu0 %5166  ;;  %10883 = vmatprep.mubr.msk.f32.mxu0 %vm11661_vm1, %v11660_v41 }
 0x5ca   :  { %11614 = vrcp.f32 %v5167_v27  ;;  %10886 = vmatprep.subr.mxu0 %v11660_v41  ;;  %10913 = vmatprep.mubr.msk.f32.mxu1 %vm11661_vm1, %v11660_v41 }
 0x5cb   :  { %10916 = vmatprep.subr.mxu1 %v11660_v41 }
 0x5cf   :  { %10884 = vmatmul.mubr.f32.vlgmr.msra.gmra.mrb[8].mxu0 %v5267_v3 }
 0x5d0   :  { %10887 = vmatpush3.msra.mxu0 %v5278_v33  ;;  %10914 = vmatmul.mubr.f32.vlgmr.msra.gmra.mrb[10].mxu1 %v5716_v29 }
 0x5d1   :  { %10917 = vmatpush3.msra.mxu1 %v5727_v10  ;;  %10888 = vmatprep.mubr.msk.f32.mxu0 %vm11661_vm1, %v11660_v41 }
 0x5d2   :  { %v5131_v2 = vpop.xlane.xlu1 %5130  ;;  %10891 = vmatprep.subr.mxu0 %v11660_v41  ;;  %10918 = vmatprep.mubr.msk.f32.mxu1 %vm11661_vm1, %v11660_v41 }
 0x5d3   :  { %v5139_v13 = vsub.f32 %v12236_v48, %v5131_v2  ;;  %10921 = vmatprep.subr.mxu1 %v11660_v41  ;;  %v6624_v48 = vsub.f32 %v1422_v44, %v12379_v47 }
 0x5d4   :  { %v11615_v53 = vpop.eup %11614 }
 0x5d5   :  { %v5187_v54 = vmul.f32 %v11615_v53, %v12252_v8  ;;  %v5154_v49 = vmul.f32 1.442695, %v5139_v13  ;;  %v6165_v8 = vand.u32 4294901760, %v12383_v50  ;;  %v6625_v62 = vand.u32 4294901760, %v6624_v48 }
 0x5d6   :  { %v1202_v46 = vpop.permute.xlu1 %1201 }
 0x5d7   :  { %11616 = vpow2.f32 %v5154_v49  ;;  %10889 = vmatmul.mubr.f32.vlgmr.msra.gmra.mrb[8].mxu0 %v12279_v51  ;;  %v6544_v55 = vsel %vm1491_vm2, %v5187_v54, 0  ;;  %v6166_v56 = vsub.f32 %v12383_v50, %v6165_v8  ;;  %v6626_v15 = vsub.f32 %v6624_v48, %v6625_v62 }
 0x5d8   :  { %10892 = vmatpush3.msra.mxu0 %v12320_v4  ;;  %10919 = vmatmul.mubr.f32.vlgmr.msra.gmra.mrb[10].mxu1 %v12304_v5  ;;  %v12391_v19 = vand.u32 4294901760, %v6544_v55 }
 0x5d9   :  { %10922 = vmatpush3.msra.mxu1 %v12322_v58  ;;  %10893 = vmatprep.mubr.msk.f32.mxu0 %vm11661_vm1, %v11660_v41  ;;  %v6167_v21 = vand.u32 4294901760, %v6166_v56  ;;  %v6627_v23 = vand.u32 4294901760, %v6626_v15 }
 0x5da   :  { %10923 = vmatprep.mubr.msk.f32.mxu1 %vm11661_vm1, %v11660_v41  ;;  %10926 = vmatprep.subr.mxu0 %v11660_v41  ;;  %v6613_v45 = vsub.f32 %v6544_v55, %v12391_v19  ;;  %v1206_v32 = vpop.permute.xlu1 %1205 }
 0x5db   :  { %10956 = vmatprep.subr.mxu1 %v11660_v41 }
 0x5dc   :  { %v6614_v11 = vand.u32 4294901760, %v6613_v45 }
 0x5de   :  { %v6615_v3 = vsub.f32 %v6613_v45, %v6614_v11 }
 0x5df   :  { %10894 = vmatmul.mubr.f32.vlgmr.msra.gmra.mrb[8].mxu0 %v12279_v51 }
 0x5e0   :  { %10924 = vmatmul.mubr.f32.vlgmr.msra.gmra.mrb[10].mxu1 %v12304_v5  ;;  %10927 = vmatpush3.msra.mxu0 %v12377_v14  ;;  %v6616_v17 = vand.u32 4294901760, %v6615_v3  ;;  %v6178_v5 = vand.u32 4294901760, %v6177_v6 }
 0x5e1   :  { %v12406_v18 = vpop.eup %11616  ;;  %10957 = vmatpush3.msra.mxu1 %v12379_v47  ;;  %10928 = vmatprep.mubr.msk.f32.mxu0 %vm11661_vm1, %v11660_v41 }
 0x5e2   :  { %10931 = vmatprep.subr.mxu0 %v11660_v41  ;;  %10958 = vmatprep.mubr.msk.f32.mxu1 %vm11661_vm1, %v11660_v41  ;;  %v5177_v51 = vsel %vm1491_vm2, %v12406_v18, 0.0 }
 0x5e3   :  { %10961 = vmatprep.subr.mxu1 %v11660_v41  ;;  %5178 = vadd.xlane.f32.xlu1 %v5177_v51 }
 0x5e4   :  { %10929 = vmatmul.mubr.f32.vlgmr.msra.gmra.mrb[10].mxu0 %v6167_v21  ;;  %10959 = vmatmul.mubr.f32.vlgmr.msra.gmra.mrb[12].mxu1 %v6616_v17 }
 0x5e5   :  { %10932 = vmatpush3.msra.mxu0 %v6178_v5  ;;  %10962 = vmatpush3.msra.mxu1 %v6627_v23 }
 0x5e6   :  { %10933 = vmatprep.mubr.msk.f32.mxu0 %vm11661_vm1, %v11660_v41  ;;  %10936 = vmatprep.subr.mxu0 %v11660_v41 }
 0x5e7   :  { %10963 = vmatprep.mubr.msk.f32.mxu1 %vm11661_vm1, %v11660_v41  ;;  %10966 = vmatprep.subr.mxu1 %v11660_v41 }
 0x5e9   :  { %v5170_v29 = vpop.xlane.xlu0 %5169 }
 0x5ea   :  { %11618 = vrcp.f32 %v5170_v29 }
 0x5ec   :  { %10934 = vmatmul.mubr.f32.vlgmr.msra.gmra.mrb[10].mxu0 %v12373_v12  ;;  %10964 = vmatmul.mubr.f32.vlgmr.msra.gmra.mrb[12].mxu1 %v12391_v19 }
 0x5ed   :  { %10937 = vmatpush3.msra.mxu0 %v6175_v20  ;;  %10967 = vmatpush3.msra.mxu1 %v6624_v48  ;;  %v1198_v4 = vpop.permute.xlu0 %1197 }
 0x5ee   :  { %10938 = vmatprep.mubr.msk.f32.mxu0 %vm11661_vm1, %v11660_v41  ;;  %10941 = vmatprep.subr.mxu0 %v11660_v41  ;;  %v1287_v57 = vcombine.low %v1198_v4, %v1206_v32  ;;  %v1288_v60 = vcombine.high %v1198_v4, %v1206_v32 }
 0x5ef   :  { %10968 = vmatprep.mubr.msk.f32.mxu1 %vm11661_vm1, %v11660_v41  ;;  %10971 = vmatprep.subr.mxu1 %v11660_v41 }
 0x5f0   :  { %v1302_v34 = vrot.slane %v1288_v60, %v11769_v22 }
 0x5f4   :  { %10939 = vmatmul.mubr.f32.vlgmr.msra.gmra.mrb[10].mxu0 %v12383_v50  ;;  %10969 = vmatmul.mubr.f32.vlgmr.msra.gmra.mrb[12].mxu1 %v6613_v45  ;;  %v11619_v30 = vpop.eup %11618 }
 0x5f5   :  { %10942 = vmatpush3.msra.mxu0 %v12377_v14  ;;  %10972 = vmatpush3.msra.mxu1 %v12379_v47  ;;  %v5189_v1 = vmul.f32 %v11619_v30, %v12260_v25  ;;  %v1295_v25 = vrot.slane %v1287_v57, %v11769_v22 }
 0x5f6   :  { %10943 = vmatprep.mubr.msk.f32.mxu0 %vm11661_vm1, %v11660_v41  ;;  %10946 = vmatprep.subr.mxu0 %v11660_v41 }
 0x5f7   :  { %10973 = vmatprep.mubr.msk.f32.mxu1 %vm11661_vm1, %v11660_v41  ;;  %10976 = vmatprep.subr.mxu1 %v11660_v41  ;;  %v6993_v10 = vsel %vm1491_vm2, %v5189_v1, 0 }
 0x5f8   :  { %v12468_v37 = vand.u32 4294901760, %v6993_v10 }
 0x5fa   :  { %v7062_v9 = vsub.f32 %v6993_v10, %v12468_v37 }
 0x5fc   :  { %10944 = vmatmul.mubr.f32.vlgmr.msra.gmra.mrb[10].mxu0 %v6165_v8  ;;  %10974 = vmatmul.mubr.f32.vlgmr.msra.gmra.mrb[12].mxu1 %v6614_v11 }
 0x5fd   :  { %10947 = vmatpush3.msra.mxu0 %v6176_v61  ;;  %10977 = vmatpush3.msra.mxu1 %v6625_v62 }
 0x5fe   :  { %10948 = vmatprep.mubr.msk.f32.mxu0 %vm11661_vm1, %v11660_v41  ;;  %10951 = vmatprep.subr.mxu0 %v11660_v41 }
 0x5ff   :  { %10978 = vmatprep.mubr.msk.f32.mxu1 %vm11661_vm1, %v11660_v41  ;;  %10981 = vmatprep.subr.mxu1 %v11660_v41 }
 0x604   :  { %10949 = vmatmul.mubr.f32.vlgmr.msra.gmra.mrb[10].mxu0 %v12373_v12  ;;  %10979 = vmatmul.mubr.f32.vlgmr.msra.gmra.mrb[12].mxu1 %v12391_v19 }
 0x605   :  { %10952 = vmatpush3.msra.mxu0 %v12377_v14  ;;  %10982 = vmatpush3.msra.mxu1 %v12379_v47 }
 0x606   :  { %10953 = vmatprep.mubr.msk.f32.mxu0 %vm11661_vm1, %v11660_v41  ;;  %10983 = vmatprep.mubr.msk.f32.mxu1 %vm11661_vm1, %v11660_v41 }
 0x607   :  { %10986 = vmatprep.subr.mxu0 %v11660_v41  ;;  %11016 = vmatprep.subr.mxu1 %v11660_v41 }
 0x60b   :  { %v5173_v58 = vpop.xlane.xlu1 %5172 }
 0x60c   :  { %11620 = vrcp.f32 %v5173_v58  ;;  %10954 = vmatmul.mubr.f32.vlgmr.msra.gmra.mrb[10].mxu0 %v12373_v12  ;;  %10984 = vmatmul.mubr.f32.vlgmr.msra.gmra.mrb[12].mxu1 %v12391_v19 }
 0x60d   :  { %10988 = vmatprep.mubr.msk.f32.mxu0 %vm11661_vm1, %v11660_v41  ;;  %11018 = vmatprep.mubr.msk.f32.mxu1 %vm11661_vm1, %v11660_v41 }
 0x60f   :  { %v1210_v0 = vpop.permute.xlu1 %1209 }
 0x610   :  { %v1303_v7 = vcombine.low %v1202_v46, %v1210_v0  ;;  %v1304_v33 = vcombine.high %v1202_v46, %v1210_v0 }
 0x612   :  { %v1311_v35 = vrot.slane %v1303_v7, %v11769_v22  ;;  %v1318_v36 = vrot.slane %v1304_v33, %v11769_v22 }
 0x614   :  { %v1319_v38 = vcombine.low %v1295_v25, %v1311_v35  ;;  %v1320_v39 = vcombine.high %v1295_v25, %v1311_v35  ;;  %v1335_v16 = vcombine.low %v1302_v34, %v1318_v36  ;;  %v1336_v26 = vcombine.high %v1302_v34, %v1318_v36 }
 0x616   :  { %v11621_v27 = vpop.eup %11620  ;;  %v1327_v40 = vrot.slane %v1319_v38, %v11784_v28  ;;  %v1334_v42 = vrot.slane %v1320_v39, %v11784_v28  ;;  %v1343_v43 = vrot.slane %v1335_v16, %v11784_v28  ;;  %v1350_v52 = vrot.slane %v1336_v26, %v11784_v28 }
 0x617   :  { %v5191_v44 = vmul.f32 %v11621_v27, %v12268_v31  ;;  %v7063_v31 = vand.u32 4294901760, %v7062_v9 }
 0x618   :  { %v1423_v2 = vcombine.low %v1327_v40, %v1334_v42  ;;  %v10250_v12 = vcombine.high %v1327_v40, %v1334_v42  ;;  %v1439_v13 = vcombine.low %v1343_v43, %v1350_v52  ;;  %v10251_v14 = vcombine.high %v1343_v43, %v1350_v52 }
 0x619   :  { %v7442_v47 = vsel %vm1491_vm2, %v5191_v44, 0  ;;  %v7064_v61 = vsub.f32 %v7062_v9, %v7063_v31 }
 0x61a   :  { %v12478_v53 = vrot.slane %v1423_v2, %v11769_v22  ;;  %v12481_v54 = vrot.slane %v10250_v12, %v11769_v22  ;;  %v12484_v49 = vrot.slane %v1439_v13, %v11769_v22  ;;  %v12487_v50 = vrot.slane %v10251_v14, %v11769_v22 }
 0x61b   :  { %v12489_v20 = vand.u32 4294901760, %v7442_v47  ;;  %v7065_v17 = vand.u32 4294901760, %v7064_v61 }
 0x61c   :  { %v1455_v48 = vcombine.low %v12478_v53, %v12481_v54  ;;  %v1471_v55 = vcombine.low %v12484_v49, %v12487_v50  ;;  %v1456_v58 = vcombine.high %v12478_v53, %v12481_v54  ;;  %v1472_v1 = vcombine.high %v12484_v49, %v12487_v50 }
 0x61d   :  { %v7511_v19 = vsub.f32 %v7442_v47, %v12489_v20 }
 0x61e   :  { %v1463_v8 = vrot.slane %v1455_v48, %v11784_v28  ;;  %v1479_v45 = vrot.slane %v1471_v55, %v11784_v28  ;;  %v1470_v57 = vrot.slane %v1456_v58, %v11784_v28  ;;  %v1486_v60 = vrot.slane %v1472_v1, %v11784_v28 }
 0x61f   :  { %v7512_v62 = vand.u32 4294901760, %v7511_v19 }
 0x620   :  { %v1487_v11 = vcombine.low %v1463_v8, %v1479_v45  ;;  %v1488_v56 = vcombine.high %v1463_v8, %v1479_v45  ;;  %v1489_v7 = vcombine.low %v1470_v57, %v1486_v60  ;;  %v1490_v33 = vcombine.high %v1470_v57, %v1486_v60 }
 0x621   :  { %v7513_v3 = vsub.f32 %v7511_v19, %v7512_v62 }
 0x622   :  { %v6996_v6 = vand.u32 4294901760, %v1487_v11  ;;  %v7445_v15 = vand.u32 4294901760, %v1488_v56  ;;  %v7894_v10 = vand.u32 4294901760, %v1489_v7  ;;  %v12541_v25 = vand.u32 4294901760, %v1490_v33 }
 0x623   :  { %v7514_v51 = vand.u32 4294901760, %v7513_v3 }
 0x624   :  { %10987 = vmatpush3.msra.mxu0 %v6996_v6  ;;  %v7073_v21 = vsub.f32 %v1487_v11, %v6996_v6  ;;  %11017 = vmatpush3.msra.mxu1 %v7445_v15  ;;  %v7522_v5 = vsub.f32 %v1488_v56, %v7445_v15  ;;  %v7971_v36 = vsub.f32 %v1489_v7, %v7894_v10 }
 0x625   :  { %10989 = vmatmul.mubr.f32.vlgmr.msra.gmra.mrb[12].mxu0 %v7065_v17  ;;  %11019 = vmatmul.mubr.f32.vlgmr.msra.gmra.mrb[14].mxu1 %v7514_v51  ;;  %v8420_v44 = vsub.f32 %v1490_v33, %v12541_v25 }
 0x626   :  { %10991 = vmatprep.subr.mxu0 %v11660_v41  ;;  %11021 = vmatprep.subr.mxu1 %v11660_v41  ;;  %v7074_v23 = vand.u32 4294901760, %v7073_v21  ;;  %v7523_v29 = vand.u32 4294901760, %v7522_v5  ;;  %v7972_v39 = vand.u32 4294901760, %v7971_v36 }
 0x627   :  { %10993 = vmatprep.mubr.msk.f32.mxu0 %vm11661_vm1, %v11660_v41  ;;  %11023 = vmatprep.mubr.msk.f32.mxu1 %vm11661_vm1, %v11660_v41  ;;  %v8421_v13 = vand.u32 4294901760, %v8420_v44 }
 0x628   :  { %v7075_v46 = vsub.f32 %v7073_v21, %v7074_v23  ;;  %v7524_v32 = vsub.f32 %v7522_v5, %v7523_v29  ;;  %v7973_v27 = vsub.f32 %v7971_v36, %v7972_v39 }
 0x629   :  { %v8422_v53 = vsub.f32 %v8420_v44, %v8421_v13 }
 0x62a   :  { %v7076_v30 = vand.u32 4294901760, %v7075_v46  ;;  %v7525_v4 = vand.u32 4294901760, %v7524_v32  ;;  %v7974_v43 = vand.u32 4294901760, %v7973_v27 }
 0x62b   :  { %v8423_v50 = vand.u32 4294901760, %v8422_v53 }
 0x62c   :  { %10992 = vmatpush3.msra.mxu0 %v7076_v30  ;;  %11022 = vmatpush3.msra.mxu1 %v7525_v4 }
 0x62d   :  { %10994 = vmatmul.mubr.f32.vlgmr.msra.gmra.mrb[12].mxu0 %v12468_v37  ;;  %10996 = vmatprep.subr.mxu0 %v11660_v41 }
 0x62e   :  { %11024 = vmatmul.mubr.f32.vlgmr.msra.gmra.mrb[14].mxu1 %v12489_v20  ;;  %11026 = vmatprep.subr.mxu1 %v11660_v41 }
 0x62f   :  { %10997 = vmatpush3.msra.mxu0 %v7073_v21  ;;  %11027 = vmatpush3.msra.mxu1 %v7522_v5 }
 0x630   :  { %10998 = vmatprep.mubr.msk.f32.mxu0 %vm11661_vm1, %v11660_v41  ;;  %11001 = vmatprep.subr.mxu0 %v11660_v41 }
 0x631   :  { %11028 = vmatprep.mubr.msk.f32.mxu1 %vm11661_vm1, %v11660_v41  ;;  %11031 = vmatprep.subr.mxu1 %v11660_v41 }
 0x635   :  { %10999 = vmatmul.mubr.f32.vlgmr.msra.gmra.mrb[12].mxu0 %v7062_v9 }
 0x636   :  { %11002 = vmatpush3.msra.mxu0 %v6996_v6  ;;  %11029 = vmatmul.mubr.f32.vlgmr.msra.gmra.mrb[14].mxu1 %v7511_v19 }
 0x637   :  { %11032 = vmatpush3.msra.mxu1 %v7445_v15  ;;  %11003 = vmatprep.mubr.msk.f32.mxu0 %vm11661_vm1, %v11660_v41 }
 0x638   :  { %11006 = vmatprep.subr.mxu0 %v11660_v41  ;;  %11033 = vmatprep.mubr.msk.f32.mxu1 %vm11661_vm1, %v11660_v41 }
 0x639   :  { %11036 = vmatprep.subr.mxu1 %v11660_v41 }
 0x63d   :  { %11004 = vmatmul.mubr.f32.vlgmr.msra.gmra.mrb[12].mxu0 %v7063_v31 }
 0x63e   :  { %11007 = vmatpush3.msra.mxu0 %v7074_v23  ;;  %11034 = vmatmul.mubr.f32.vlgmr.msra.gmra.mrb[14].mxu1 %v7512_v62 }
 0x63f   :  { %11037 = vmatpush3.msra.mxu1 %v7523_v29  ;;  %11008 = vmatprep.mubr.msk.f32.mxu0 %vm11661_vm1, %v11660_v41 }
 0x640   :  { %11011 = vmatprep.subr.mxu0 %v11660_v41  ;;  %11038 = vmatprep.mubr.msk.f32.mxu1 %vm11661_vm1, %v11660_v41 }
 0x641   :  { %11041 = vmatprep.subr.mxu1 %v11660_v41 }
 0x645   :  { %v5176_v0 = vpop.xlane.xlu0 %5175  ;;  %11009 = vmatmul.mubr.f32.vlgmr.msra.gmra.mrb[12].mxu0 %v12468_v37 }
 0x646   :  { %11622 = vrcp.f32 %v5176_v0  ;;  %11012 = vmatpush3.msra.mxu0 %v6996_v6  ;;  %11039 = vmatmul.mubr.f32.vlgmr.msra.gmra.mrb[14].mxu1 %v12489_v20 }
 0x647   :  { %11042 = vmatpush3.msra.mxu1 %v7445_v15  ;;  %11013 = vmatprep.mubr.msk.f32.mxu0 %vm11661_vm1, %v11660_v41 }
 0x648   :  { %11043 = vmatprep.mubr.msk.f32.mxu1 %vm11661_vm1, %v11660_v41  ;;  %11046 = vmatprep.subr.mxu0 %v11660_v41 }
 0x649   :  { %11076 = vmatprep.subr.mxu1 %v11660_v41 }
 0x64d   :  { %11014 = vmatmul.mubr.f32.vlgmr.msra.gmra.mrb[12].mxu0 %v12468_v37 }
 0x64e   :  { %11044 = vmatmul.mubr.f32.vlgmr.msra.gmra.mrb[14].mxu1 %v12489_v20  ;;  %11047 = vmatpush3.msra.mxu0 %v7894_v10 }
 0x64f   :  { %11077 = vmatpush3.msra.mxu1 %v12541_v25  ;;  %11048 = vmatprep.mubr.msk.f32.mxu0 %vm11661_vm1, %v11660_v41 }
 0x650   :  { %v11623_v34 = vpop.eup %11622  ;;  %11051 = vmatprep.subr.mxu0 %v11660_v41  ;;  %11078 = vmatprep.mubr.msk.f32.mxu1 %vm11661_vm1, %v11660_v41 }
 0x651   :  { %v5193_v35 = vmul.f32 %v11623_v34, %v12324_v24  ;;  %11081 = vmatprep.subr.mxu1 %v11660_v41 }
 0x653   :  { %v7891_v37 = vsel %vm1491_vm2, %v5193_v35, 0 }
 0x654   :  { %v7959_v38 = vand.u32 4294901760, %v7891_v37 }
 0x656   :  { %v7960_v16 = vsub.f32 %v7891_v37, %v7959_v38 }
 0x658   :  { %v7961_v26 = vand.u32 4294901760, %v7960_v16 }
 0x65a   :  { %v7962_v40 = vsub.f32 %v7960_v16, %v7961_v26 }
 0x65c   :  { %v7963_v42 = vand.u32 4294901760, %v7962_v40 }
 0x65e   :  { %11049 = vmatmul.mubr.f32.vlgmr.msra.gmra.mrb[14].mxu0 %v7963_v42 }
 0x65f   :  { %11052 = vmatpush3.msra.mxu0 %v7974_v43  ;;  %11053 = vmatprep.mubr.msk.f32.mxu0 %vm11661_vm1, %v11660_v41 }
 0x660   :  { %11056 = vmatprep.subr.mxu0 %v11660_v41 }
 0x666   :  { %11054 = vmatmul.mubr.f32.vlgmr.msra.gmra.mrb[14].mxu0 %v7959_v38 }
 0x667   :  { %11057 = vmatpush3.msra.mxu0 %v7971_v36  ;;  %11058 = vmatprep.mubr.msk.f32.mxu0 %vm11661_vm1, %v11660_v41 }
 0x668   :  { %11061 = vmatprep.subr.mxu0 %v11660_v41 }
 0x66e   :  { %11059 = vmatmul.mubr.f32.vlgmr.msra.gmra.mrb[14].mxu0 %v7960_v16 }
 0x66f   :  { %11062 = vmatpush3.msra.mxu0 %v7894_v10  ;;  %11063 = vmatprep.mubr.msk.f32.mxu0 %vm11661_vm1, %v11660_v41 }
 0x670   :  { %v5179_v24 = vpop.xlane.xlu1 %5178  ;;  %11066 = vmatprep.subr.mxu0 %v11660_v41 }
 0x671   :  { %11624 = vrcp.f32 %v5179_v24 }
 0x676   :  { %11064 = vmatmul.mubr.f32.vlgmr.msra.gmra.mrb[14].mxu0 %v7961_v26 }
 0x677   :  { %11067 = vmatpush3.msra.mxu0 %v7972_v39  ;;  %11068 = vmatprep.mubr.msk.f32.mxu0 %vm11661_vm1, %v11660_v41 }
 0x678   :  { %11071 = vmatprep.subr.mxu0 %v11660_v41 }
 0x67b   :  { %v11625_v52 = vpop.eup %11624 }
 0x67c   :  { %v5195_v9 = vmul.f32 %v11625_v52, %v12406_v18 }
 0x67e   :  { %11069 = vmatmul.mubr.f32.vlgmr.msra.gmra.mrb[14].mxu0 %v7959_v38  ;;  %v8340_v2 = vsel %vm1491_vm2, %v5195_v9, 0 }
 0x67f   :  { %11072 = vmatpush3.msra.mxu0 %v7894_v10  ;;  %11073 = vmatprep.mubr.msk.f32.mxu0 %vm11661_vm1, %v11660_v41  ;;  %v8408_v12 = vand.u32 4294901760, %v8340_v2 }
 0x681   :  { %v8409_v14 = vsub.f32 %v8340_v2, %v8408_v12 }
 0x683   :  { %v8410_v47 = vand.u32 4294901760, %v8409_v14 }
 0x685   :  { %v8411_v54 = vsub.f32 %v8409_v14, %v8410_v47 }
 0x686   :  { %11074 = vmatmul.mubr.f32.vlgmr.msra.gmra.mrb[14].mxu0 %v7959_v38 }
 0x687   :  { %v8412_v49 = vand.u32 4294901760, %v8411_v54 }
 0x689   :  { %11079 = vmatmul.mubr.f32.vlgmr.msra.gmra.mrb[16].mxu1 %v8412_v49 }
 0x68a   :  { %11082 = vmatpush3.msra.mxu1 %v8423_v50  ;;  %11083 = vmatprep.mubr.msk.f32.mxu1 %vm11661_vm1, %v11660_v41 }
 0x68b   :  { %11086 = vmatprep.subr.mxu1 %v11660_v41 }
 0x691   :  { %11084 = vmatmul.mubr.f32.vlgmr.msra.gmra.mrb[16].mxu1 %v8408_v12 }
 0x692   :  { %11087 = vmatpush3.msra.mxu1 %v8420_v44  ;;  %11088 = vmatprep.mubr.msk.f32.mxu1 %vm11661_vm1, %v11660_v41 }
 0x693   :  { %11091 = vmatprep.subr.mxu1 %v11660_v41 }
 0x699   :  { %11089 = vmatmul.mubr.f32.vlgmr.msra.gmra.mrb[16].mxu1 %v8409_v14 }
 0x69a   :  { %11092 = vmatpush3.msra.mxu1 %v12541_v25  ;;  %11093 = vmatprep.mubr.msk.f32.mxu1 %vm11661_vm1, %v11660_v41 }
 0x69b   :  { %11096 = vmatprep.subr.mxu1 %v11660_v41 }
 0x6a1   :  { %11094 = vmatmul.mubr.f32.vlgmr.msra.gmra.mrb[16].mxu1 %v8410_v47 }
 0x6a2   :  { %11097 = vmatpush3.msra.mxu1 %v8421_v13  ;;  %11098 = vmatprep.mubr.msk.f32.mxu1 %vm11661_vm1, %v11660_v41 }
 0x6a3   :  { %11101 = vmatprep.subr.mxu1 %v11660_v41 }
 0x6a9   :  { %11099 = vmatmul.mubr.f32.vlgmr.msra.gmra.mrb[16].mxu1 %v8408_v12 }
 0x6aa   :  { %11102 = vmatpush3.msra.mxu1 %v12541_v25  ;;  %11103 = vmatprep.mubr.msk.f32.mxu1 %vm11661_vm1, %v11660_v41 }
 0x6b1   :  { %11104 = vmatmul.mubr.f32.vlgmr.msra.gmra.mrb[16].mxu1 %v8408_v12 }
 0x6b2   :  { %v5641_v18 = vpop.f32.mrb[8].mxu0 }
 0x6b3   :  { %v6090_v31 = vpop.f32.mrb[10].mxu1  ;;  %v10895_v20 = vpop.f32.mrb[9].mxu0 }
 0x6b4   :  { %v10925_v48 = vpop.f32.mrb[11].mxu1 }
 0x6df   :  { %v6539_v55 = vpop.f32.mrb[10].mxu0  ;;  %v6988_v19 = vpop.f32.mrb[12].mxu1 }
 0x6e0   :  { %v8788_v8 = vcombine.low %v5641_v18, %v6539_v55  ;;  %v8789_v45 = vcombine.high %v5641_v18, %v6539_v55  ;;  %v8804_v61 = vcombine.low %v6090_v31, %v6988_v19  ;;  %v8805_v62 = vcombine.high %v6090_v31, %v6988_v19  ;;  %v10955_v11 = vpop.f32.mrb[11].mxu0  ;;  %v10985_v56 = vpop.f32.mrb[13].mxu1 }
 0x6e2   :  { %v8796_v3 = vrot.slane %v8788_v8, %v11769_v22  ;;  %v8803_v6 = vrot.slane %v8789_v45, %v11769_v22  ;;  %v8812_v15 = vrot.slane %v8804_v61, %v11769_v22  ;;  %v8819_v41 = vrot.slane %v8805_v62, %v11769_v22 }
 0x6e4   :  { %v8820_v17 = vcombine.low %v8796_v3, %v8812_v15  ;;  %v8821_v51 = vcombine.high %v8796_v3, %v8812_v15  ;;  %v8836_v21 = vcombine.low %v8803_v6, %v8819_v41  ;;  %v8837_v5 = vcombine.high %v8803_v6, %v8819_v41 }
 0x6e6   :  { %v8828_v23 = vrot.slane %v8820_v17, %v11784_v28  ;;  %v8835_v29 = vrot.slane %v8821_v51, %v11784_v28  ;;  %v8844_v46 = vrot.slane %v8836_v21, %v11784_v28  ;;  %v8851_v32 = vrot.slane %v8837_v5, %v11784_v28 }
 0x6e8   :  { %v8924_v30 = vcombine.low %v8828_v23, %v8835_v29  ;;  %v10252_v4 = vcombine.high %v8828_v23, %v8835_v29  ;;  %v8940_v58 = vcombine.low %v8844_v46, %v8851_v32  ;;  %v10253_v1 = vcombine.high %v8844_v46, %v8851_v32 }
 0x6ea   :  { %v8931_v57 = vrot.slane %v8924_v30, %v11769_v22  ;;  %v8939_v60 = vrot.slane %v10252_v4, %v11769_v22  ;;  %v8947_v0 = vrot.slane %v8940_v58, %v11769_v22  ;;  %v8955_v7 = vrot.slane %v10253_v1, %v11769_v22 }
 0x6ec   :  { %v8956_v33 = vcombine.low %v8931_v57, %v8939_v60  ;;  %v8972_v10 = vcombine.low %v8947_v0, %v8955_v7  ;;  %v8957_v25 = vcombine.high %v8931_v57, %v8939_v60  ;;  %v8973_v34 = vcombine.high %v8947_v0, %v8955_v7 }
 0x6ee   :  { %v8964_v35 = vrot.slane %v8956_v33, %v11784_v28  ;;  %v8980_v36 = vrot.slane %v8972_v10, %v11784_v28  ;;  %v8971_v37 = vrot.slane %v8957_v25, %v11784_v28  ;;  %v8987_v38 = vrot.slane %v8973_v34, %v11784_v28 }
 0x6f0   :  { %v8989_v39 = vcombine.high %v8964_v35, %v8980_v36  ;;  %v8990_v16 = vcombine.low %v8971_v37, %v8987_v38  ;;  %v8991_v26 = vcombine.high %v8971_v37, %v8987_v38  ;;  %v8988_v27 = vcombine.low %v8964_v35, %v8980_v36 }
 0x6f2   :  { %9062 = vrot.lane.b32.xlu0 %v8989_v39, %s11663_s12 }
 0x6f6   :  { %9070 = vrot.lane.b32.xlu0 %v8990_v16, %s11664_s13 }
 0x6fa   :  { %9078 = vrot.lane.b32.xlu0 %v8991_v26, %s11665_s14 }
 0x720   :  { %v7437_v40 = vpop.f32.mrb[12].mxu0 }
 0x721   :  { %v7886_v42 = vpop.f32.mrb[14].mxu1  ;;  %v11015_v43 = vpop.f32.mrb[13].mxu0 }
 0x722   :  { %v11045_v24 = vpop.f32.mrb[15].mxu1 }
 0x759   :  { %v8335_v52 = vpop.f32.mrb[14].mxu0 }
 0x75a   :  { %v8856_v44 = vcombine.low %v7437_v40, %v8335_v52  ;;  %v8857_v9 = vcombine.high %v7437_v40, %v8335_v52  ;;  %v11075_v2 = vpop.f32.mrb[15].mxu0 }
 0x75c   :  { %v8864_v55 = vrot.slane %v8856_v44, %v11769_v22  ;;  %v8871_v19 = vrot.slane %v8857_v9, %v11769_v22  ;;  %v10256_v9 = vld [vmem:[%s12750_s4 + $0x2] ss:$0 sm:$0xff] }
 0x764   :  { %v9063_v12 = vpop.permute.xlu0 %9062 }
 0x765   :  { %v9084_v14 = vsel %vm1491_vm2, %v8988_v27, %v9063_v12 }
 0x768   :  { %v9071_v13 = vpop.permute.xlu0 %9070 }
 0x769   :  { %v9087_v47 = vsel %vm9086_vm3, %v9084_v14, %v9071_v13  ;;  %v10257_v14 = vld [vmem:[%s12750_s4 + $0x3] ss:$0 sm:$0xff] }
 0x76c   :  { %v9079_v53 = vpop.permute.xlu0 %9078 }
 0x76d   :  { %v9090_v54 = vsel %vm9089_vm4, %v9087_v47, %v9079_v53 }
 0x76e   :  { %v9092_v49 = vadd.f32 %v9090_v54, %v11734_v59 }
 0x770   :  { %v9094_v50 = vsel %vm29_vm0, %v9092_v49, 0.0 }
 0x771   :  { %9095 = vadd.xlane.f32.xlu0 %v9094_v50 }
 0x784   :  { %v8784_v18 = vpop.f32.mrb[16].mxu1 }
 0x785   :  { %v8872_v31 = vcombine.low %v7886_v42, %v8784_v18  ;;  %v8873_v20 = vcombine.high %v7886_v42, %v8784_v18  ;;  %v11105_v48 = vpop.f32.mrb[17].mxu1 }
 0x787   :  { %v8880_v8 = vrot.slane %v8872_v31, %v11769_v22  ;;  %v8887_v45 = vrot.slane %v8873_v20, %v11769_v22 }
 0x789   :  { %v8888_v61 = vcombine.low %v8864_v55, %v8880_v8  ;;  %v8889_v62 = vcombine.high %v8864_v55, %v8880_v8  ;;  %v8904_v11 = vcombine.low %v8871_v19, %v8887_v45  ;;  %v8905_v56 = vcombine.high %v8871_v19, %v8887_v45  ;;  %v9132_v19 = vld [vmem:[%s12748_s2] sm:$0xff]  ;;  %v9133_v8 = vld [vmem:[%s12748_s2 + $0x8] sm:$0xff]  ;;  %v9134_v45 = vld [vmem:[%s12748_s2 + $0x10] sm:$0xff] }
 0x78b   :  { %v8896_v59 = vrot.slane %v8888_v61, %v11784_v28  ;;  %v8903_v3 = vrot.slane %v8889_v62, %v11784_v28  ;;  %v8912_v6 = vrot.slane %v8904_v11, %v11784_v28  ;;  %v8919_v15 = vrot.slane %v8905_v56, %v11784_v28  ;;  %v9135_v11 = vld [vmem:[%s12748_s2 + $0x18] sm:$0xff] }
 0x78c   :  { %v9147_v61 = vand.u32 4294901760, %v9132_v19  ;;  %v9150_v62 = vand.u32 4294901760, %v9133_v8  ;;  %v9153_v56 = vand.u32 4294901760, %v9134_v45 }
 0x78d   :  { %v8992_v41 = vcombine.low %v8896_v59, %v8903_v3  ;;  %v10254_v17 = vcombine.high %v8896_v59, %v8903_v3  ;;  %v9008_v51 = vcombine.low %v8912_v6, %v8919_v15  ;;  %v10255_v21 = vcombine.high %v8912_v6, %v8919_v15 }
 0x78e   :  { %v9156_v59 = vand.u32 4294901760, %v9135_v11  ;;  %v12667_v3 = vpack.c.bf16 %v9150_v62, %v9147_v61  ;;  %v9237_v15 = vsub.f32 %v9132_v19, %v9147_v61 }
 0x78f   :  { %v8999_v5 = vrot.slane %v8992_v41, %v11769_v22  ;;  %v9007_v23 = vrot.slane %v10254_v17, %v11769_v22  ;;  %v9015_v29 = vrot.slane %v9008_v51, %v11769_v22  ;;  %v9023_v46 = vrot.slane %v10255_v21, %v11769_v22 }
 0x790   :  { %v12669_v6 = vpack.c.bf16 %v9156_v59, %v9153_v56  ;;  %11287 = vmatprep.subr.bf16.mxu0 %v12667_v3  ;;  %v9244_v41 = vsub.f32 %v9133_v8, %v9150_v62  ;;  %v9238_v17 = vand.u32 4294901760, %v9237_v15 }
 0x791   :  { %v9024_v32 = vcombine.low %v8999_v5, %v9007_v23  ;;  %v9040_v30 = vcombine.low %v9015_v29, %v9023_v46  ;;  %v9025_v4 = vcombine.high %v8999_v5, %v9007_v23  ;;  %v9041_v58 = vcombine.high %v9015_v29, %v9023_v46  ;;  %11289 = vmatpush3.bf16.msra.mxu0 %v12667_v3 }
 0x792   :  { %11291 = vmatprep.subr.bf16.mxu0 %v12669_v6  ;;  %v9245_v51 = vand.u32 4294901760, %v9244_v41  ;;  %v9239_v21 = vsub.f32 %v9237_v15, %v9238_v17  ;;  %v9251_v23 = vsub.f32 %v9134_v45, %v9153_v56  ;;  %v9258_v29 = vsub.f32 %v9135_v11, %v9156_v59 }
 0x793   :  { %v9032_v1 = vrot.slane %v9024_v32, %v11784_v28  ;;  %v9048_v57 = vrot.slane %v9040_v30, %v11784_v28  ;;  %v9039_v60 = vrot.slane %v9025_v4, %v11784_v28  ;;  %v9055_v0 = vrot.slane %v9041_v58, %v11784_v28 }
 0x794   :  { %v9246_v5 = vsub.f32 %v9244_v41, %v9245_v51  ;;  %v9240_v46 = vand.u32 4294901760, %v9239_v21  ;;  %v9252_v30 = vand.u32 4294901760, %v9251_v23  ;;  %v9259_v4 = vand.u32 4294901760, %v9258_v29  ;;  %v10258_v21 = vld [vmem:[%s12750_s4 + $0x4] ss:$0 sm:$0xff] }
 0x795   :  { %v9057_v7 = vcombine.high %v9032_v1, %v9048_v57  ;;  %v9058_v33 = vcombine.low %v9039_v60, %v9055_v0  ;;  %v9059_v10 = vcombine.high %v9039_v60, %v9055_v0  ;;  %v9056_v25 = vcombine.low %v9032_v1, %v9048_v57  ;;  %11293 = vmatpush3.bf16.msra.mxu0 %v12669_v6 }
 0x796   :  { %v9247_v32 = vand.u32 4294901760, %v9246_v5  ;;  %v9253_v1 = vsub.f32 %v9251_v23, %v9252_v30  ;;  %v9260_v57 = vsub.f32 %v9258_v29, %v9259_v4 }
 0x797   :  { %9064 = vrot.lane.b32.xlu1 %v9057_v7, %s11663_s12 }
 0x798   :  { %v11294_v58 = vpack.c.bf16 %v9247_v32, %v9240_v46  ;;  %v9254_v60 = vand.u32 4294901760, %v9253_v1  ;;  %v9261_v0 = vand.u32 4294901760, %v9260_v57 }
 0x79a   :  { %11295 = vmatprep.subr.bf16.mxu0 %v11294_v58  ;;  %v11298_v7 = vpack.c.bf16 %v9261_v0, %v9254_v60 }
 0x79b   :  { %9072 = vrot.lane.b32.xlu1 %v9058_v33, %s11664_s13  ;;  %v11302_v33 = vpack.c.bf16 %v9244_v41, %v9237_v15  ;;  %s11630_s13 = scalar_lea.vmem %s10228_s11, 256 }
 0x79c   :  { %p11631_p0 = scmp.ne.s32.totalorder %s10228_s11, %s11630_s13  ;;  %p11636_p2 = scmp.lt.s32.totalorder %s11630_s13, %s11630_s13 }
 0x79e   :  { %p11637_p3 = por %p11636_p2, %p11635_p1 }
 0x79f   :  { %9080 = vrot.lane.b32.xlu1 %v9059_v10, %s11665_s14  ;;  %v11306_v10 = vpack.c.bf16 %v9258_v29, %v9251_v23 }
 0x7a0   :  { %p11638_p4 = pnand %p11637_p3, %p11631_p0 }
 0x7fe   :  { %v9096_v22 = vpop.xlane.xlu0 %9095 }
 0x7ff   :  { %v9100_v34 = vmul.f32 0.03125, %v9096_v22  ;;  %v11322_v22 = vpack.c.bf16 %v9259_v4, %v9252_v30 }
 0x801   :  { %v9102_v35 = vsub.f32 %v9092_v49, %v9100_v34 }
 0x803   :  { %v9104_v36 = vmul.f32 %v9102_v35, %v9102_v35 }
 0x805   :  { %v9106_v37 = vsel %vm29_vm0, %v9104_v36, 0.0 }
 0x806   :  { %9107 = vadd.xlane.f32.xlu0 %v9106_v37 }
 0x809   :  { %v9065_v38 = vpop.permute.xlu1 %9064 }
 0x80a   :  { %v9085_v28 = vsel %vm1491_vm2, %v9056_v25, %v9065_v38  ;;  %v11318_v25 = vpack.c.bf16 %v9245_v51, %v9238_v17 }
 0x80d   :  { %v9073_v39 = vpop.permute.xlu1 %9072 }
 0x80e   :  { %v9088_v16 = vsel %vm9086_vm3, %v9085_v28, %v9073_v39 }
 0x811   :  { %v9081_v26 = vpop.permute.xlu1 %9080 }
 0x812   :  { %v9091_v27 = vsel %vm9089_vm4, %v9088_v16, %v9081_v26 }
 0x813   :  { %v9093_v40 = vadd.f32 %v9091_v27, %v11738_v63 }
 0x815   :  { %v9097_v42 = vsel %vm29_vm0, %v9093_v40, 0.0 }
 0x816   :  { %9098 = vadd.xlane.f32.xlu1 %v9097_v42 }
 0x893   :  { %v9108_v43 = vpop.xlane.xlu0 %9107 }
 0x894   :  { %v9112_v24 = vmul.f32 0.03125, %v9108_v43 }
 0x896   :  { %v9114_v52 = vadd.f32 1e-05, %v9112_v24  ;;  %v9676_v24 = vld [vmem:[%s12749_s3] sm:$0xff] }
 0x898   :  { %11626 = vrsqrt.f32 %v9114_v52  ;;  %v9677_v52 = vld [vmem:[%s12749_s3 + $0x8] sm:$0xff] }
 0x8a2   :  { %v11627_v44 = vpop.eup %11626 }
 0x8a3   :  { %v9118_v2 = vmul.f32 %v11627_v44, %v9102_v35  ;;  %v9099_v12 = vpop.xlane.xlu1 %9098  ;;  %v9678_v44 = vld [vmem:[%s12749_s3 + $0x10] sm:$0xff] }
 0x8a4   :  { %v9101_v13 = vmul.f32 0.03125, %v9099_v12  ;;  %v9679_v12 = vld [vmem:[%s12749_s3 + $0x18] sm:$0xff] }
 0x8a5   :  { %v9124_v63 = vmul.f32 %v10256_v9, %v9118_v2  ;;  %v9694_v2 = vand.u32 4294901760, %v9677_v52 }
 0x8a6   :  { %v9103_v47 = vsub.f32 %v9093_v40, %v9101_v13  ;;  %v9697_v13 = vand.u32 4294901760, %v9678_v44 }
 0x8a7   :  { %v12641_v53 = vadd.f32 %v10257_v14, %v9124_v63 }
 0x8a8   :  { %v9105_v54 = vmul.f32 %v9103_v47, %v9103_v47 }
 0x8a9   :  { %v9141_v49 = vsel %vm29_vm0, %v12641_v53, 0 }
 0x8aa   :  { %v9109_v50 = vsel %vm29_vm0, %v9105_v54, 0.0  ;;  %v12646_v18 = vand.u32 4294901760, %v9141_v49  ;;  %v9788_v54 = vsub.f32 %v9677_v52, %v9694_v2 }
 0x8ab   :  { %9110 = vadd.xlane.f32.xlu0 %v9109_v50 }
 0x8ac   :  { %v12649_v31 = vsub.f32 %v9141_v49, %v12646_v18 }
 0x8ae   :  { %v9217_v20 = vand.u32 4294901760, %v12649_v31 }
 0x8b0   :  { %v9218_v48 = vsub.f32 %v12649_v31, %v9217_v20 }
 0x8b2   :  { %v9219_v55 = vand.u32 4294901760, %v9218_v48  ;;  %v9795_v48 = vsub.f32 %v9678_v44, %v9697_v13 }
 0x8b4   :  { %11114 = vmatprep.mubr.f32.mxu0 %v9219_v55  ;;  %v9796_v45 = vand.u32 4294901760, %v9795_v48 }
 0x8b6   :  { %v9797_v11 = vsub.f32 %v9795_v48, %v9796_v45 }
 0x8b8   :  { %v9798_v59 = vand.u32 4294901760, %v9797_v11 }
 0x938   :  { %v9111_v34 = vpop.xlane.xlu0 %9110 }
 0x939   :  { %v9113_v35 = vmul.f32 0.03125, %v9111_v34 }
 0x93b   :  { %v9115_v36 = vadd.f32 1e-05, %v9113_v35  ;;  %v10259_v35 = vld [vmem:[%s12750_s4 + $0x5] ss:$0 sm:$0xff] }
 0x93d   :  { %11628 = vrsqrt.f32 %v9115_v36 }
 0x947   :  { %v11629_v37 = vpop.eup %11628 }
 0x948   :  { %v9119_v38 = vmul.f32 %v11629_v37, %v9103_v47 }
 0x94a   :  { %v9125_v39 = vmul.f32 %v10256_v9, %v9119_v38  ;;  %v9691_v9 = vand.u32 4294901760, %v9676_v24 }
 0x94c   :  { %v12675_v28 = vadd.f32 %v10257_v14, %v9125_v39  ;;  %v9700_v14 = vand.u32 4294901760, %v9679_v12  ;;  %v12705_v63 = vpack.c.bf16 %v9694_v2, %v9691_v9  ;;  %v9781_v47 = vsub.f32 %v9676_v24, %v9691_v9 }
 0x94e   :  { %v9144_v16 = vsel %vm29_vm0, %v12675_v28, 0  ;;  %v12707_v49 = vpack.c.bf16 %v9700_v14, %v9697_v13  ;;  %11335 = vmatprep.subr.bf16.mxu1 %v12705_v63  ;;  %v9782_v50 = vand.u32 4294901760, %v9781_v47  ;;  %v9802_v55 = vsub.f32 %v9679_v12, %v9700_v14 }
 0x94f   :  { %v9225_v26 = vand.u32 4294901760, %v9144_v16  ;;  %11337 = vmatpush3.bf16.msra.mxu1 %v12705_v63  ;;  %v11350_v15 = vpack.c.bf16 %v9788_v54, %v9781_v47 }
 0x950   :  { %11339 = vmatprep.subr.bf16.mxu1 %v12707_v49  ;;  %v9803_v61 = vand.u32 4294901760, %v9802_v55  ;;  %v11354_v41 = vpack.c.bf16 %v9802_v55, %v9795_v48 }
 0x951   :  { %v9226_v27 = vsub.f32 %v9144_v16, %v9225_v26 }
 0x952   :  { %v9804_v56 = vsub.f32 %v9802_v55, %v9803_v61  ;;  %v11370_v51 = vpack.c.bf16 %v9803_v61, %v9796_v45 }
 0x953   :  { %v9227_v40 = vand.u32 4294901760, %v9226_v27  ;;  %11341 = vmatpush3.bf16.msra.mxu1 %v12707_v49 }
 0x955   :  { %v9228_v42 = vsub.f32 %v9226_v27, %v9227_v40 }
 0x957   :  { %v9229_v43 = vand.u32 4294901760, %v9228_v42 }
 0x959   :  { %11115 = vmatmul.mubr.f32.vlgmr.msra.gmra.mrb[16].mxu0 %v9229_v43 }
 0x95a   :  { %11297 = vmatpush3.bf16.msra.mxu0 %v11294_v58  ;;  %11125 = vmatprep.mubr.f32.mxu0 %v12646_v18 }
 0x95b   :  { %11299 = vmatprep.subr.bf16.mxu0 %v11298_v7 }
 0x95e   :  { %11301 = vmatpush3.bf16.msra.mxu0 %v11298_v7 }
 0x95f   :  { %11303 = vmatprep.subr.bf16.mxu0 %v11302_v33 }
 0x961   :  { %11126 = vmatmul.mubr.f32.vlgmr.msra.gmra.mrb[16].mxu0 %v9225_v26 }
 0x962   :  { %11305 = vmatpush3.bf16.msra.mxu0 %v11302_v33  ;;  %11136 = vmatprep.mubr.f32.mxu0 %v12649_v31  ;;  %v9783_v31 = vsub.f32 %v9781_v47, %v9782_v50 }
 0x963   :  { %11307 = vmatprep.subr.bf16.mxu0 %v11306_v10 }
 0x964   :  { %v9784_v19 = vand.u32 4294901760, %v9783_v31 }
 0x966   :  { %11309 = vmatpush3.bf16.msra.mxu0 %v11306_v10 }
 0x967   :  { %11311 = vmatprep.subr.bf16.mxu0 %v12667_v3 }
 0x969   :  { %11137 = vmatmul.mubr.f32.vlgmr.msra.gmra.mrb[16].mxu0 %v9226_v27 }
 0x96a   :  { %11313 = vmatpush3.bf16.msra.mxu0 %v12667_v3  ;;  %11147 = vmatprep.mubr.f32.mxu0 %v9217_v20 }
 0x96b   :  { %11315 = vmatprep.subr.bf16.mxu0 %v12669_v6 }
 0x96e   :  { %11317 = vmatpush3.bf16.msra.mxu0 %v12669_v6 }
 0x96f   :  { %11319 = vmatprep.subr.bf16.mxu0 %v11318_v25 }
 0x971   :  { %11148 = vmatmul.mubr.f32.vlgmr.msra.gmra.mrb[16].mxu0 %v9227_v40 }
 0x972   :  { %11321 = vmatpush3.bf16.msra.mxu0 %v11318_v25  ;;  %11158 = vmatprep.mubr.f32.mxu0 %v12646_v18 }
 0x973   :  { %11323 = vmatprep.subr.bf16.mxu0 %v11322_v22 }
 0x976   :  { %11325 = vmatpush3.bf16.msra.mxu0 %v11322_v22 }
 0x977   :  { %11327 = vmatprep.subr.bf16.mxu0 %v12667_v3 }
 0x979   :  { %11159 = vmatmul.mubr.f32.vlgmr.msra.gmra.mrb[16].mxu0 %v9225_v26 }
 0x97a   :  { %11329 = vmatpush3.bf16.msra.mxu0 %v12667_v3  ;;  %11169 = vmatprep.mubr.f32.mxu0 %v12646_v18  ;;  %v9789_v18 = vand.u32 4294901760, %v9788_v54  ;;  %v9805_v3 = vand.u32 4294901760, %v9804_v56 }
 0x97b   :  { %11331 = vmatprep.subr.bf16.mxu0 %v12669_v6 }
 0x97c   :  { %v9790_v20 = vsub.f32 %v9788_v54, %v9789_v18  ;;  %v11366_v17 = vpack.c.bf16 %v9789_v18, %v9782_v50 }
 0x97e   :  { %11333 = vmatpush3.bf16.msra.mxu0 %v12669_v6  ;;  %v9791_v8 = vand.u32 4294901760, %v9790_v20  ;;  %v11346_v6 = vpack.c.bf16 %v9805_v3, %v9798_v59 }
 0x980   :  { %v11342_v62 = vpack.c.bf16 %v9791_v8, %v9784_v19 }
 0x981   :  { %11170 = vmatmul.mubr.f32.vlgmr.msra.gmra.mrb[16].mxu0 %v9225_v26 }
 0x982   :  { %11343 = vmatprep.subr.bf16.mxu1 %v11342_v62 }
 0xa54   :  { %v11171_v5 = vpop.f32.mrb[16].mxu0 }
 0xa55   :  { %v11382_v23 = vadd.f32 %v11171_v5, %v10258_v21  ;;  %v9664_v29 = vpop.f32.mrb[17].mxu0 }
 0xa56   :  { %v11383_v46 = vadd.f32 %v10258_v21, %v9664_v29 }
 0xa57   :  { %v9675_v32 = vmax.f32 %v11382_v23, 0.0 }
 0xa58   :  { %v9674_v30 = vmax.f32 %v11383_v46, 0.0 }
 0xa59   :  { %v9688_v4 = vsel %vm29_vm0, %v9675_v32, 0 }
 0xa5a   :  { %v9769_v58 = vand.u32 4294901760, %v9688_v4  ;;  %v9685_v1 = vsel %vm29_vm0, %v9674_v30, 0 }
 0xa5b   :  { %v9759_v57 = vand.u32 4294901760, %v9685_v1 }
 0xa5c   :  { %v9770_v60 = vsub.f32 %v9688_v4, %v9769_v58 }
 0xa5d   :  { %v9760_v0 = vsub.f32 %v9685_v1, %v9759_v57 }
 0xa5e   :  { %v9771_v7 = vand.u32 4294901760, %v9770_v60 }
 0xa5f   :  { %v9761_v33 = vand.u32 4294901760, %v9760_v0 }
 0xa60   :  { %v9772_v10 = vsub.f32 %v9770_v60, %v9771_v7 }
 0xa61   :  { %v9762_v25 = vsub.f32 %v9760_v0, %v9761_v33 }
 0xa62   :  { %v9773_v34 = vand.u32 4294901760, %v9772_v10 }
 0xa63   :  { %v9763_v22 = vand.u32 4294901760, %v9762_v25 }
 0xa65   :  { %11180 = vmatprep.mubr.f32.mxu1 %v9763_v22 }
 0xa66   :  { %11181 = vmatmul.mubr.f32.vlgmr.msra.gmra.mrb[18].mxu1 %v9773_v34 }
 0xa67   :  { %11345 = vmatpush3.bf16.msra.mxu1 %v11342_v62  ;;  %11191 = vmatprep.mubr.f32.mxu1 %v9759_v57 }
 0xa68   :  { %11347 = vmatprep.subr.bf16.mxu1 %v11346_v6 }
 0xa6b   :  { %11349 = vmatpush3.bf16.msra.mxu1 %v11346_v6 }
 0xa6c   :  { %11351 = vmatprep.subr.bf16.mxu1 %v11350_v15 }
 0xa6e   :  { %11192 = vmatmul.mubr.f32.vlgmr.msra.gmra.mrb[18].mxu1 %v9769_v58 }
 0xa6f   :  { %11353 = vmatpush3.bf16.msra.mxu1 %v11350_v15  ;;  %11202 = vmatprep.mubr.f32.mxu1 %v9760_v0 }
 0xa70   :  { %11355 = vmatprep.subr.bf16.mxu1 %v11354_v41 }
 0xa73   :  { %11357 = vmatpush3.bf16.msra.mxu1 %v11354_v41 }
 0xa74   :  { %11359 = vmatprep.subr.bf16.mxu1 %v12705_v63 }
 0xa76   :  { %11203 = vmatmul.mubr.f32.vlgmr.msra.gmra.mrb[18].mxu1 %v9770_v60 }
 0xa77   :  { %11361 = vmatpush3.bf16.msra.mxu1 %v12705_v63  ;;  %11213 = vmatprep.mubr.f32.mxu1 %v9761_v33 }
 0xa78   :  { %11363 = vmatprep.subr.bf16.mxu1 %v12707_v49 }
 0xa7b   :  { %11365 = vmatpush3.bf16.msra.mxu1 %v12707_v49 }
 0xa7c   :  { %11367 = vmatprep.subr.bf16.mxu1 %v11366_v17 }
 0xa7e   :  { %11214 = vmatmul.mubr.f32.vlgmr.msra.gmra.mrb[18].mxu1 %v9771_v7 }
 0xa7f   :  { %11369 = vmatpush3.bf16.msra.mxu1 %v11366_v17  ;;  %11224 = vmatprep.mubr.f32.mxu1 %v9759_v57 }
 0xa80   :  { %11371 = vmatprep.subr.bf16.mxu1 %v11370_v51 }
 0xa83   :  { %11373 = vmatpush3.bf16.msra.mxu1 %v11370_v51 }
 0xa84   :  { %11375 = vmatprep.subr.bf16.mxu1 %v12705_v63 }
 0xa86   :  { %11225 = vmatmul.mubr.f32.vlgmr.msra.gmra.mrb[18].mxu1 %v9769_v58 }
 0xa87   :  { %11377 = vmatpush3.bf16.msra.mxu1 %v12705_v63  ;;  %11235 = vmatprep.mubr.f32.mxu1 %v9759_v57 }
 0xa88   :  { %11379 = vmatprep.subr.bf16.mxu1 %v12707_v49 }
 0xa8b   :  { %11381 = vmatpush3.bf16.msra.mxu1 %v12707_v49 }
 0xa8e   :  { %11236 = vmatmul.mubr.f32.vlgmr.msra.gmra.mrb[18].mxu1 %v9769_v58 }
 0xb61   :  { %v11237_v36 = vpop.f32.mrb[18].mxu1 }
 0xb62   :  { %v11384_v37 = vadd.f32 %v11237_v36, %v10259_v35  ;;  %v10208_v38 = vpop.f32.mrb[19].mxu1 }
 0xb63   :  { %v11385_v39 = vadd.f32 %v10259_v35, %v10208_v38 }
 0xb64   :  { %v10219_v16 = vadd.f32 %v11384_v37, %v12675_v28 }
 0xb65   :  { %v10218_v26 = vadd.f32 %v11385_v39, %v12641_v53 }
 0xb66   :  { %10221 = vst.msk [vmem:[#allocation2 + $0x8] sm:$0xff] %vm29_vm0, %v10219_v16 }
 0xb67   :  { %10220 = vst.msk [vmem:[#allocation2] sm:$0xff] %vm29_vm0, %v10218_v26 }
 0xb68   :  { %11641 = shalt.err (!%p11638_p4)
}
 0xb69   :  { %s11642_s15 = scalar_lea.hbm %s12751_s5, 256 }
 0xb6a   :  { %p11643_p5 = scmp.ne.s32.totalorder %s12751_s5, %s11642_s15  ;;  %p11646_p6 = scmp.lt.u32.totalorder %s11642_s15, %s12751_s5 }
 0xb6c   :  { %p11648_p7 = pnand %p11646_p6, %p11643_p5 }
 0xb6e   :  { %11651 = shalt.err (!%p11648_p7)
}
 0xb6f   :  { %s11667_s20 = smov 128  }
 0xb70   :  { %10233 = dma.vmem_to_hbm [thread:$0]  %s10228_s11, 256, %s12751_s5, [#allocation3], %s11667_s20, %s11667_s20, %s11663_s12  }
 0xb71   :  { %11652 = dma.done.wait [#allocation3], 256  }
 0xb72   :  { %11653 = vsyncadd [#allocation3], 4294967040 }
 0xb73   :  { %10237 = vsyncpa [#allocation3], 1 }

</bundles_post_ra>
